<compile_context>
chip_gen: v7x
topology: tpu7x:2x2x1
jax: 0.10.0
libtpu: 0.0.40
codegen_flags: <defaults>
</compile_context>

<pallas_src>
import math

import jax
import jax.numpy as jnp
from jax.experimental import pallas as pl
from jax.experimental.pallas import tpu as pltpu


def _round_up(x, m):
    return ((x + m - 1) // m) * m


def _vmem_capacity_bytes():
    """Physical per-core VMEM; conservative 64 MiB (v7x) fallback."""
    try:
        return int(pltpu.get_tpu_info().vmem_capacity_bytes)
    except Exception:
        return 64 << 20


def _vmem_need(tm, tk, f_pad, n_pad):
    """Bytes Pallas will actually allocate for this tiling (double-buffered
    input/output blocks + the f32 accumulator scratch)."""
    return (2 * tm * tk * 4          # x tiles (f32 in HBM, cast in-kernel)
            + 2 * tk * f_pad * 2     # w_enc tiles (bf16)
            + 2 * f_pad * n_pad * 2  # w_head (constant index, still 2 buffers)
            + 2 * n_pad * 4          # bias
            + 2 * tm * n_pad * 4     # logits out (f32)
            + 2 * tm * f_pad * 2     # features out (bf16)
            + tm * f_pad * 4)        # f32 accumulator scratch


def _pick_tiles(batch, d_in, f_pad, n_pad, budget):
    """Prefer one batch tile (w_enc streamed from HBM exactly once), then the
    largest K tile that fits the VMEM budget.  tm floor is 128 rows so the
    256/128-wide MXU passes stay full."""
    k_ceil = _round_up(d_in, 128)
    b_ceil = max(128, _round_up(batch, 128))
    tm_cands = ([b_ceil] if b_ceil <= 2048 else [])
    tm_cands += [t for t in (512, 256, 128) if t < b_ceil]
    for tm in tm_cands:
        for tk in (2048, 1024, 512, 256, 128):
            tk_e = min(tk, k_ceil)
            if _vmem_need(tm, tk_e, f_pad, n_pad) <= budget:
                return tm, tk_e
    # TODO(synk): head tiling / second pallas_call if even (128, 128) blows VMEM.
    return 128, 128


def _model_wrapper_kernel(x_ref, w_enc_ref, w_head_ref, b_head_ref,
                          logits_ref, feat_ref, acc_ref):
    """features = x @ W_enc (K-tiled, f32 acc); features /= ||features||_2;
    logits = features @ W_head + b.  Normalization + head run only on the
    last K step, on the full resident accumulator."""
    k = pl.program_id(1)

    @pl.when(k == 0)
    def _init():
        acc_ref[...] = jnp.zeros_like(acc_ref)

    # encode_image stand-in: x arrives f32, cast to bf16 in VMEM (VPU, cheap)
    # so HBM sees exactly one f32 read of x.  bf16 MXU, f32 accumulation.
    acc_ref[...] += jnp.dot(x_ref[...].astype(jnp.bfloat16), w_enc_ref[...],
                            preferred_element_type=jnp.float32)

    @pl.when(k == pl.num_programs(1) - 1)
    def _finalize():
        feats = acc_ref[...]
        # self.normalize: features / features.norm(dim=-1, keepdim=True)
        # rsqrt -> EUP slot; max() guards zero-padded rows against NaN.
        sq_sum = jnp.sum(feats * feats, axis=-1, keepdims=True)
        sq_sum = jnp.maximum(sq_sum, jnp.float32(1e-30))
        feats = feats * jax.lax.rsqrt(sq_sum)

        # classification head: Linear(feature_dim, num_classes) + bias.
        logits = jnp.dot(feats.astype(w_head_ref.dtype), w_head_ref[...],
                         preferred_element_type=jnp.float32) + b_head_ref[...]

        logits_ref[...] = logits.astype(logits_ref.dtype)
        feat_ref[...] = feats.astype(feat_ref.dtype)


def prepare_model(w_enc, w_head, b_head, batch_size):
    """One-time (parameter-load-time) padding / bf16 casting of the static
    weights plus tile-size / VMEM planning.  Returns a dict consumed by
    model_wrapper_forward."""
    d_in, feature_dim = w_enc.shape
    num_classes = w_head.shape[1]

    f_pad = _round_up(feature_dim, 128)
    n_pad = _round_up(num_classes, 128)

    vmem_cap = _vmem_capacity_bytes()
    budget = min(int(0.70 * vmem_cap), 100 << 20)   # 44.8 MiB v7x, ~89.6 MiB v6e

    tm, tk = _pick_tiles(batch_size, d_in, f_pad, n_pad, budget)
    b_pad = _round_up(max(batch_size, 1), tm)
    k_pad = _round_up(d_in, tk)

    need = _vmem_need(tm, tk, f_pad, n_pad)
    vmem_limit = int(min(max(need + (8 << 20), 16 << 20), 0.9 * vmem_cap))

    w_enc_p = jnp.pad(w_enc.astype(jnp.bfloat16),
                      ((0, k_pad - d_in), (0, f_pad - feature_dim)))
    w_head_p = jnp.pad(w_head.astype(jnp.bfloat16),
                       ((0, f_pad - feature_dim), (0, n_pad - num_classes)))
    b_head_p = jnp.pad(b_head.astype(jnp.float32),
                       (0, n_pad - num_classes)).reshape(1, n_pad)

    return dict(w_enc_p=w_enc_p, w_head_p=w_head_p, b_head_p=b_head_p,
                tm=tm, tk=tk, b_pad=b_pad, k_pad=k_pad,
                d_in=d_in, feature_dim=feature_dim, num_classes=num_classes,
                f_pad=f_pad, n_pad=n_pad, vmem_limit=vmem_limit)


def model_wrapper_forward(images, prep):
    """images: (B, C, H, W) float32 (NCHW, PyTorch convention).
    Returns (logits f32, features bf16) — matching forward(..., return_features=True)
    with normalize=True (features quantized to bf16 for the HBM writeback)."""
    B = images.shape[0]
    tm, tk = prep["tm"], prep["tk"]
    b_pad, k_pad = prep["b_pad"], prep["k_pad"]
    d_in, f_pad, n_pad = prep["d_in"], prep["f_pad"], prep["n_pad"]
    assert B <= b_pad and images.reshape(B, -1).shape[1] == d_in

    # Free reshape; pad (f32) only when shapes require it — no bf16 staging pass.
    x = images.reshape(B, d_in)
    if (b_pad, k_pad) != (B, d_in):
        x = jnp.pad(x, ((0, b_pad - B), (0, k_pad - d_in)))

    grid = (b_pad // tm, k_pad // tk)
    n_i = grid[0]

    cost = pl.CostEstimate(
        flops=2 * b_pad * k_pad * f_pad + 2 * b_pad * f_pad * n_pad,
        transcendentals=b_pad,
        bytes_accessed=(b_pad * k_pad * 4               # x, f32, read once
                        + n_i * k_pad * f_pad * 2       # w_enc re-read per batch tile
                        + n_i * f_pad * n_pad * 2       # w_head (resident over K)
                        + n_i * n_pad * 4               # bias
                        + b_pad * n_pad * 4             # logits writeback (f32)
                        + b_pad * f_pad * 2),           # features writeback (bf16)
    )

    logits_p, feats_p = pl.pallas_call(
        _model_wrapper_kernel,
        out_shape=(
            jax.ShapeDtypeStruct((b_pad, n_pad), jnp.float32),
            jax.ShapeDtypeStruct((b_pad, f_pad), jnp.bfloat16),
        ),
        grid_spec=pltpu.PrefetchScalarGridSpec(
            num_scalar_prefetch=0,
            grid=grid,
            in_specs=[
                pl.BlockSpec((tm, tk), lambda i, k: (i, k)),        # x tile (f32)
                pl.BlockSpec((tk, f_pad), lambda i, k: (k, 0)),     # w_enc tile (bf16)
                pl.BlockSpec((f_pad, n_pad), lambda i, k: (0, 0)),  # w_head (resident)
                pl.BlockSpec((1, n_pad), lambda i, k: (0, 0)),      # bias (resident)
            ],
            out_specs=(
                pl.BlockSpec((tm, n_pad), lambda i, k: (i, 0)),     # logits (f32)
                pl.BlockSpec((tm, f_pad), lambda i, k: (i, 0)),     # features (bf16)
            ),
            scratch_shapes=[pltpu.VMEM((tm, f_pad), jnp.float32)],  # f32 accumulator
        ),
        compiler_params=pltpu.CompilerParams(
            dimension_semantics=("parallel", "arbitrary"),
            vmem_limit_bytes=prep["vmem_limit"],
        ),
        cost_estimate=cost,
    )(x, prep["w_enc_p"], prep["w_head_p"], prep["b_head_p"])

    num_classes, feature_dim = prep["num_classes"], prep["feature_dim"]
    return logits_p[:B, :num_classes], feats_p[:B, :feature_dim]


def _kaiming_uniform(key, shape, a=math.sqrt(5)):
    # torch.nn.init.kaiming_uniform_(w, a=sqrt(5)) on a (out, in) weight:
    # bound = sqrt(6 / ((1 + a^2) * fan_in)) = 1 / sqrt(fan_in)
    fan_in = shape[1]
    bound = math.sqrt(6.0 / ((1.0 + a * a) * fan_in))
    return jax.random.uniform(key, shape, jnp.float32, -bound, bound)


if __name__ == "__main__":
    # Small shapes consistent with the module.
    B, C, H, W = 2, 4, 16, 16          # images: NCHW
    feature_dim, num_classes = 32, 8

    key = jax.random.PRNGKey(0)
    k_img, k_enc, k_head = jax.random.split(key, 3)

    images = jax.random.normal(k_img, (B, C, H, W), jnp.float32)

    # Synthetic encoder weights (deterministic).
    w_enc = jax.random.normal(k_enc, (C * H * W, feature_dim), jnp.float32) * 0.02

    # Classification head: kaiming_uniform_(a=sqrt(5)) weight, zero bias —
    # exactly as in ModelWrapper.__init__ when initial_weights is None.
    w_head_torch_layout = _kaiming_uniform(k_head, (num_classes, feature_dim))
    w_head = w_head_torch_layout.T          # (feature_dim, num_classes)
    b_head = jnp.zeros((num_classes,), jnp.float32)

    # One-time parameter staging / planning, then the fused forward.
    prep = prepare_model(w_enc, w_head, b_head, batch_size=B)
    logits, feats = model_wrapper_forward(images, prep)
    jax.block_until_ready((logits, feats))

    # Pure-JAX reference with the same bf16 MXU operand quantization / f32 acc.
    x_flat = images.reshape(B, -1)
    ref_feats = jnp.dot(x_flat.astype(jnp.bfloat16), w_enc.astype(jnp.bfloat16),
                        preferred_element_type=jnp.float32)
    ref_feats = ref_feats / jnp.linalg.norm(ref_feats, axis=-1, keepdims=True)
    ref_logits = jnp.dot(ref_feats.astype(jnp.bfloat16),
                         w_head.astype(jnp.bfloat16),
                         preferred_element_type=jnp.float32) + b_head

    assert jnp.allclose(logits, ref_logits, atol=2e-3, rtol=2e-3)
    # features are stored in bf16 by the kernel -> compare at bf16 tolerance.
    assert jnp.allclose(feats.astype(jnp.float32), ref_feats, atol=8e-3, rtol=8e-3)

    print("KERNEL_OK")
</pallas_src>

<mosaic_0001>
module attributes {stable_mosaic.version = 11 : i64} {
  func.func @_model_wrapper_kernel(%arg0: i32, %arg1: i32, %arg2: memref<128x1024xf32, #tpu.memory_space<vmem>>, %arg3: memref<1024x128xbf16, #tpu.memory_space<vmem>>, %arg4: memref<128x128xbf16, #tpu.memory_space<vmem>>, %arg5: memref<1x128xf32, #tpu.memory_space<vmem>>, %arg6: memref<128x128xf32, #tpu.memory_space<vmem>>, %arg7: memref<128x128xbf16, #tpu.memory_space<vmem>>, %arg8: memref<128x128xf32, #tpu.memory_space<vmem>>) attributes {dimension_semantics = [#tpu.dimension_semantics<parallel>, #tpu.dimension_semantics<arbitrary>], iteration_bounds = array<i64: 1, 1>, scalar_prefetch = 0 : i64, scratch_operands = 1 : i64, tpu.core_type = #tpu.core_type<tc>, window_params = [{transform_indices = @transform_0, window_bounds = array<i64: 128, 1024>}, {transform_indices = @transform_1, window_bounds = array<i64: 1024, 128>}, {pipeline_mode = #tpu.pipeline_mode<synchronous>, transform_indices = @transform_2, window_bounds = array<i64: 128, 128>}, {pipeline_mode = #tpu.pipeline_mode<synchronous>, transform_indices = @transform_3, window_bounds = array<i64: 1, 128>}, {transform_indices = @transform_4, window_bounds = array<i64: 128, 128>}, {transform_indices = @transform_5, window_bounds = array<i64: 128, 128>}]} {
    %c0_i32 = arith.constant 0 : i32
    %0 = arith.cmpi eq, %arg1, %c0_i32 : i32
    %1 = arith.extui %0 : i1 to i32
    %c0_i32_0 = arith.constant 0 : i32
    %2 = arith.cmpi ne, %1, %c0_i32_0 : i32
    scf.if %2 {
      %cst_10 = arith.constant 0.000000e+00 : f32
      %13 = vector.broadcast %cst_10 : f32 to vector<128x128xf32>
      %c0_11 = arith.constant 0 : index
      %c0_12 = arith.constant 0 : index
      %14 = vector.load %arg8[%c0_11, %c0_12] : memref<128x128xf32, #tpu.memory_space<vmem>>, vector<128x128xf32>
      tpu.vector_store %arg8[%c0_11, %c0_12], %13 {strides = array<i32>} : memref<128x128xf32, #tpu.memory_space<vmem>>, vector<128x128xf32>,
    } else {
    }
    %c0 = arith.constant 0 : index
    %c0_1 = arith.constant 0 : index
    %3 = vector.load %arg8[%c0, %c0_1] : memref<128x128xf32, #tpu.memory_space<vmem>>, vector<128x128xf32>
    %c0_2 = arith.constant 0 : index
    %c0_3 = arith.constant 0 : index
    %4 = vector.load %arg2[%c0_2, %c0_3] : memref<128x1024xf32, #tpu.memory_space<vmem>>, vector<128x1024xf32>
    %5 = arith.truncf %4 : vector<128x1024xf32> to vector<128x1024xbf16>
    %c0_4 = arith.constant 0 : index
    %c0_5 = arith.constant 0 : index
    %6 = vector.load %arg3[%c0_4, %c0_5] : memref<1024x128xbf16, #tpu.memory_space<vmem>>, vector<1024x128xbf16>
    %cst = arith.constant dense<0.000000e+00> : vector<128x128xf32>
    %7 = tpu.matmul %5, %6, %cst {dimension_numbers = #tpu.dot_dimension_numbers<[1], [0], [0], [1], [0, 0, 1, 1], [], []>} : vector<128x1024xbf16>, vector<1024x128xbf16>, vector<128x128xf32> -> vector<128x128xf32>
    %8 = arith.addf %3, %7 : vector<128x128xf32>
    %c0_6 = arith.constant 0 : index
    %c0_7 = arith.constant 0 : index
    %9 = vector.load %arg8[%c0_6, %c0_7] : memref<128x128xf32, #tpu.memory_space<vmem>>, vector<128x128xf32>
    tpu.vector_store %arg8[%c0_6, %c0_7], %8 {strides = array<i32>} : memref<128x128xf32, #tpu.memory_space<vmem>>, vector<128x128xf32>,
    %c0_i32_8 = arith.constant 0 : i32
    %10 = arith.cmpi eq, %arg1, %c0_i32_8 : i32
    %11 = arith.extui %10 : i1 to i32
    %c0_i32_9 = arith.constant 0 : i32
    %12 = arith.cmpi ne, %11, %c0_i32_9 : i32
    scf.if %12 {
      %c0_10 = arith.constant 0 : index
      %c0_11 = arith.constant 0 : index
      %13 = vector.load %arg8[%c0_10, %c0_11] : memref<128x128xf32, #tpu.memory_space<vmem>>, vector<128x128xf32>
      %14 = arith.mulf %13, %13 : vector<128x128xf32>
      %cst_12 = arith.constant dense<0.000000e+00> : vector<128xf32>
      %15 = vector.multi_reduction <add>, %14, %cst_12 [1] : vector<128x128xf32> to vector<128xf32>
      %16 = vector.shape_cast %15 : vector<128xf32> to vector<128x1xf32>
      %cst_13 = arith.constant 1.000000e-30 : f32
      %17 = vector.broadcast %cst_13 : f32 to vector<128x1xf32>
      %18 = arith.maximumf %16, %17 : vector<128x1xf32>
      %19 = math.rsqrt %18 : vector<128x1xf32>
      %20 = vector.broadcast %19 : vector<128x1xf32> to vector<128x128xf32>
      %21 = arith.mulf %13, %20 : vector<128x128xf32>
      %22 = arith.truncf %21 : vector<128x128xf32> to vector<128x128xbf16>
      %c0_14 = arith.constant 0 : index
      %c0_15 = arith.constant 0 : index
      %23 = vector.load %arg4[%c0_14, %c0_15] : memref<128x128xbf16, #tpu.memory_space<vmem>>, vector<128x128xbf16>
      %cst_16 = arith.constant dense<0.000000e+00> : vector<128x128xf32>
      %24 = tpu.matmul %22, %23, %cst_16 {dimension_numbers = #tpu.dot_dimension_numbers<[1], [0], [0], [1], [0, 0, 1, 1], [], []>} : vector<128x128xbf16>, vector<128x128xbf16>, vector<128x128xf32> -> vector<128x128xf32>
      %c0_17 = arith.constant 0 : index
      %c0_18 = arith.constant 0 : index
      %25 = vector.load %arg5[%c0_17, %c0_18] : memref<1x128xf32, #tpu.memory_space<vmem>>, vector<1x128xf32>
      %26 = vector.broadcast %25 : vector<1x128xf32> to vector<128x128xf32>
      %27 = arith.addf %24, %26 : vector<128x128xf32>
      %c0_19 = arith.constant 0 : index
      %c0_20 = arith.constant 0 : index
      %28 = vector.load %arg6[%c0_19, %c0_20] : memref<128x128xf32, #tpu.memory_space<vmem>>, vector<128x128xf32>
      tpu.vector_store %arg6[%c0_19, %c0_20], %27 {strides = array<i32>} : memref<128x128xf32, #tpu.memory_space<vmem>>, vector<128x128xf32>,
      %29 = arith.truncf %21 : vector<128x128xf32> to vector<128x128xbf16>
      %c0_21 = arith.constant 0 : index
      %c0_22 = arith.constant 0 : index
      %30 = vector.load %arg7[%c0_21, %c0_22] : memref<128x128xbf16, #tpu.memory_space<vmem>>, vector<128x128xbf16>
      tpu.vector_store %arg7[%c0_21, %c0_22], %29 {strides = array<i32>} : memref<128x128xbf16, #tpu.memory_space<vmem>>, vector<128x128xbf16>,
    } else {
    }
    return
  }
  func.func @transform_0(%arg0: i32, %arg1: i32) -> (i32, i32) {
    %c0_i32 = arith.constant 0 : i32
    return %arg0, %arg1 : i32, i32
  }
  func.func @transform_1(%arg0: i32, %arg1: i32) -> (i32, i32) {
    %c0_i32 = arith.constant 0 : i32
    %c0_i32_0 = arith.constant 0 : i32
    return %arg1, %c0_i32 : i32, i32
  }
  func.func @transform_2(%arg0: i32, %arg1: i32) -> (i32, i32) {
    %c0_i32 = arith.constant 0 : i32
    %c0_i32_0 = arith.constant 0 : i32
    %c0_i32_1 = arith.constant 0 : i32
    return %c0_i32, %c0_i32_0 : i32, i32
  }
  func.func @transform_3(%arg0: i32, %arg1: i32) -> (i32, i32) {
    %c0_i32 = arith.constant 0 : i32
    %c0_i32_0 = arith.constant 0 : i32
    %c0_i32_1 = arith.constant 0 : i32
    return %c0_i32, %c0_i32_0 : i32, i32
  }
  func.func @transform_4(%arg0: i32, %arg1: i32) -> (i32, i32) {
    %c0_i32 = arith.constant 0 : i32
    %c0_i32_0 = arith.constant 0 : i32
    return %arg0, %c0_i32 : i32, i32
  }
  func.func @transform_5(%arg0: i32, %arg1: i32) -> (i32, i32) {
    %c0_i32 = arith.constant 0 : i32
    %c0_i32_0 = arith.constant 0 : i32
    return %arg0, %c0_i32 : i32, i32
  }
}

</mosaic_0001>

<bundles_post_ra>
// kernel: tpu_custom_call.1
= control target key start
LH: loop header
LB: loop body
LE: loop exit
PB: predicated region body
PF: predicated region fallthrough
CT: control target
= control target key end

     0   :  { %11 = vsyncpa [#allocation4], 0  ;;  %s2581_s0 = inlined_call_operand.hbm [shape: f32[128,1024], index: 0, kind: input, shape index: {}]   ;;  %s2582_s1 = inlined_call_operand.hbm [shape: bf16[1024,128], index: 1, kind: input, shape index: {}]   ;;  %s2583_s2 = inlined_call_operand.hbm [shape: bf16[128,128], index: 2, kind: input, shape index: {}]   ;;  %s2584_s3 = inlined_call_operand.vmem [shape: f32[1,128], index: 3, kind: input, shape index: {}]   ;;  %s2585_s4 = inlined_call_operand.hbm [shape: f32[128,128], index: 4, kind: output, shape index: {0}]   ;;  %s2586_s5 = inlined_call_operand.hbm [shape: bf16[128,128], index: 5, kind: output, shape index: {1}]  }
   0x1   :  { %12 = vsyncpa [#allocation7], 0 }
   0x2   :  { %13 = vsyncpa [#allocation5], 0 }
   0x3   :  { %14 = vsyncpa [#allocation11], 0  ;;  %s2340_s18 = smov [#allocation6]   ;;  %s2222_s22 = scalar_lea.hbm %s2582_s1, 8192 }
   0x4   :  { %s32_s19 = sshll.u32 %s2340_s18, 4  ;;  %p2223_p0 = scmp.ne.s32.totalorder %s2582_s1, %s2222_s22  ;;  %s33_s19 = int_to_ptr.vmem [resolvable:$true] %s32_s19 }
   0x5   :  { %p2226_p1 = scmp.lt.u32.totalorder %s2222_s22, %s2582_s1 }
   0x7   :  { %p2228_p2 = pnand %p2226_p1, %p2223_p0 }
   0x9   :  { %2231 = shalt.err (!%p2228_p2)
}
   0xa   :  { %s2232_s27 = scalar_lea.vmem %s33_s19, 8192  ;;  %p2237_p4 = scmp.lt.s32.totalorder %s33_s19, %s33_s19 }
   0xb   :  { %p2233_p3 = scmp.ne.s32.totalorder %s33_s19, %s2232_s27  ;;  %p2238_p5 = scmp.lt.s32.totalorder %s2232_s27, %s2232_s27 }
   0xd   :  { %p2239_p6 = por %p2238_p5, %p2237_p4 }
   0xf   :  { %p2240_p7 = pnand %p2239_p6, %p2233_p3 }
  0x11   :  { %2243 = shalt.err (!%p2240_p7)
}
  0x12   :  { %s2341_s28 = smov 64   ;;  %s2342_s29 = smov 4  }
  0x13   :  { %38 = dma.hbm_to_vmem [thread:$0]  %s2582_s1, 8192, %s33_s19, [#allocation7], %s2341_s28, %s2341_s28, %s2342_s29  }
  0x14   :  { %s2343_s7 = smov [#allocation3]   ;;  %s2244_s11 = scalar_lea.hbm %s2581_s0, 16384 }
  0x15   :  { %s20_s8 = sshll.u32 %s2343_s7, 4  ;;  %p2245_p8 = scmp.ne.s32.totalorder %s2581_s0, %s2244_s11  ;;  %s21_s8 = int_to_ptr.vmem [resolvable:$true] %s20_s8 }
  0x16   :  { %p2248_p9 = scmp.lt.u32.totalorder %s2244_s11, %s2581_s0 }
  0x18   :  { %p2250_p10 = pnand %p2248_p9, %p2245_p8 }
  0x1a   :  { %2253 = shalt.err (!%p2250_p10)
}
  0x1b   :  { %s2254_s16 = scalar_lea.vmem %s21_s8, 16384  ;;  %p2259_p12 = scmp.lt.s32.totalorder %s21_s8, %s21_s8 }
  0x1c   :  { %p2255_p11 = scmp.ne.s32.totalorder %s21_s8, %s2254_s16  ;;  %p2260_p13 = scmp.lt.s32.totalorder %s2254_s16, %s2254_s16 }
  0x1e   :  { %p2261_p0 = por %p2260_p13, %p2259_p12 }
  0x20   :  { %p2262_p1 = pnand %p2261_p0, %p2255_p11 }
  0x22   :  { %2265 = shalt.err (!%p2262_p1)
}
  0x23   :  { %s2344_s1 = smov 1024   ;;  %s2345_s19 = smov [#allocation8]  }
  0x24   :  { %26 = dma.hbm_to_vmem [thread:$0]  %s2581_s0, 16384, %s21_s8, [#allocation4], %s2344_s1, %s2344_s1, %s2341_s28  }
  0x25   :  { %s44_s20 = sshll.u32 %s2345_s19, 4  ;;  %s2266_s23 = scalar_lea.hbm %s2583_s2, 1024  ;;  %s45_s20 = int_to_ptr.vmem [resolvable:$true] %s44_s20 }
  0x26   :  { %p2267_p2 = scmp.ne.s32.totalorder %s2583_s2, %s2266_s23  ;;  %p2270_p3 = scmp.lt.u32.totalorder %s2266_s23, %s2583_s2 }
  0x28   :  { %p2272_p4 = pnand %p2270_p3, %p2267_p2 }
  0x2a   :  { %2275 = shalt.err (!%p2272_p4)
}
  0x2b   :  { %s2276_s30 = scalar_lea.vmem %s45_s20, 1024  ;;  %p2281_p6 = scmp.lt.s32.totalorder %s45_s20, %s45_s20 }
  0x2c   :  { %p2277_p5 = scmp.ne.s32.totalorder %s45_s20, %s2276_s30  ;;  %p2282_p7 = scmp.lt.s32.totalorder %s2276_s30, %s2276_s30 }
  0x2e   :  { %p2283_p8 = por %p2282_p7, %p2281_p6 }
  0x30   :  { %p2284_p9 = pnand %p2283_p8, %p2277_p5 }
  0x32   :  { %2287 = shalt.err (!%p2284_p9)
}
  0x33   :  { %50 = dma.hbm_to_vmem [thread:$0]  %s2583_s2, 1024, %s45_s20, [#allocation7], %s2341_s28, %s2341_s28, %s2342_s29  }
  0x34   :  { %2332 = dma.done.wait [#allocation4], 16384  }
  0x35   :  { %2333 = vsyncadd [#allocation4], 4294950912 }
  0x36   :  { %2334 = dma.done.wait [#allocation7], 9216  }
  0x37   :  { %2335 = vsyncadd [#allocation7], 4294958080  ;;  %v2118_v0 = vld [vmem:[#allocation6 + $0x40] sm:$0xff]   ;;  %v2122_v4 = vld [vmem:[#allocation6 + $0x48] sm:$0xff]   ;;  %s2346_s2 = smov [#allocation10]  }
  0x38   :  { %v2119_v1 = vld [vmem:[#allocation6 + $0xc0] sm:$0xff]   ;;  %1788 = vmatprep.subr.bf16.mxu0 %v2118_v0  ;;  %v2123_v5 = vld [vmem:[#allocation6 + $0xc8] sm:$0xff]   ;;  %v2126_v8 = vld [vmem:[#allocation6 + $0x50] sm:$0xff]   ;;  %s1619_s7 = sshll.u32 %s2346_s2, 4  ;;  %s1620_s7 = int_to_ptr.vmem [resolvable:$true] %s1619_s7 }
  0x39   :  { %v2120_v2 = vld [vmem:[#allocation6] sm:$0xff]   ;;  %1852 = vmatprep.subr.bf16.mxu1 %v2119_v1  ;;  %v2124_v6 = vld [vmem:[#allocation6 + $0x8] sm:$0xff]   ;;  %v2127_v9 = vld [vmem:[#allocation6 + $0xd0] sm:$0xff]   ;;  %s2288_s8 = scalar_lea.vmem %s1620_s7, 1024  ;;  %p2293_p11 = scmp.lt.s32.totalorder %s1620_s7, %s1620_s7 }
  0x3a   :  { %v2121_v3 = vld [vmem:[#allocation6 + $0x80] sm:$0xff]   ;;  %1789 = vmatpush3.bf16.msra.mxu0 %v2120_v2  ;;  %v2125_v7 = vld [vmem:[#allocation6 + $0x88] sm:$0xff]   ;;  %v2128_v10 = vld [vmem:[#allocation6 + $0x10] sm:$0xff]   ;;  %p2289_p10 = scmp.ne.s32.totalorder %s1620_s7, %s2288_s8  ;;  %p2294_p12 = scmp.lt.s32.totalorder %s2288_s8, %s2288_s8 }
  0x3b   :  { %1853 = vmatpush3.bf16.msra.mxu1 %v2121_v3  ;;  %1790 = vmatprep.subr.bf16.mxu0 %v2122_v4  ;;  %v2129_v11 = vld [vmem:[#allocation6 + $0x90] sm:$0xff]   ;;  %v2130_v12 = vld [vmem:[#allocation6 + $0x58] sm:$0xff]   ;;  %v2134_v16 = vld [vmem:[#allocation6 + $0x60] sm:$0xff]  }
  0x3c   :  { %1854 = vmatprep.subr.bf16.mxu1 %v2123_v5  ;;  %v2131_v13 = vld [vmem:[#allocation6 + $0xd8] sm:$0xff]   ;;  %v2135_v17 = vld [vmem:[#allocation6 + $0xe0] sm:$0xff]   ;;  %v2138_v20 = vld [vmem:[#allocation6 + $0x68] sm:$0xff]   ;;  %p2295_p13 = por %p2294_p12, %p2293_p11 }
  0x3d   :  { %v2132_v14 = vld [vmem:[#allocation6 + $0x18] sm:$0xff]   ;;  %v2136_v18 = vld [vmem:[#allocation6 + $0x20] sm:$0xff]   ;;  %v2139_v21 = vld [vmem:[#allocation6 + $0xe8] sm:$0xff]  }
  0x3e   :  { %1791 = vmatpush3.bf16.msra.mxu0 %v2124_v6  ;;  %v2133_v15 = vld [vmem:[#allocation6 + $0x98] sm:$0xff]   ;;  %v2137_v19 = vld [vmem:[#allocation6 + $0xa0] sm:$0xff]   ;;  %v2140_v22 = vld [vmem:[#allocation6 + $0x28] sm:$0xff]   ;;  %p2296_p0 = pnand %p2295_p13, %p2289_p10 }
  0x3f   :  { %1855 = vmatpush3.bf16.msra.mxu1 %v2125_v7  ;;  %1792 = vmatprep.subr.bf16.mxu0 %v2126_v8  ;;  %v2141_v23 = vld [vmem:[#allocation6 + $0xa8] sm:$0xff]   ;;  %v2142_v24 = vld [vmem:[#allocation6 + $0x70] sm:$0xff]   ;;  %v2146_v28 = vld [vmem:[#allocation6 + $0x78] sm:$0xff]  }
  0x40   :  { %1856 = vmatprep.subr.bf16.mxu1 %v2127_v9  ;;  %v2143_v25 = vld [vmem:[#allocation6 + $0xf0] sm:$0xff]   ;;  %v2147_v29 = vld [vmem:[#allocation6 + $0xf8] sm:$0xff]   ;;  %v100_v32 = vld [vmem:[#allocation3 + $0x8] sm:$0xff] }
  0x41   :  { %v2144_v26 = vld [vmem:[#allocation6 + $0x30] sm:$0xff]   ;;  %v2148_v30 = vld [vmem:[#allocation6 + $0x38] sm:$0xff]   ;;  %v108_v33 = vld [vmem:[#allocation3 + $0x48] sm:$0xff] }
  0x42   :  { %1793 = vmatpush3.bf16.msra.mxu0 %v2128_v10  ;;  %v2145_v27 = vld [vmem:[#allocation6 + $0xb0] sm:$0xff]   ;;  %v2149_v31 = vld [vmem:[#allocation6 + $0xb8] sm:$0xff]   ;;  %v228_v35 = vpack.c.bf16 %v108_v33, %v100_v32  ;;  %v99_v37 = vld [vmem:[#allocation3] sm:$0xff] }
  0x43   :  { %1857 = vmatpush3.bf16.msra.mxu1 %v2129_v11  ;;  %1794 = vmatprep.subr.bf16.mxu0 %v2130_v12  ;;  %v102_v34 = vld [vmem:[#allocation3 + $0x18] sm:$0xff]  ;;  %v107_v38 = vld [vmem:[#allocation3 + $0x40] sm:$0xff]  ;;  %v101_v41 = vld [vmem:[#allocation3 + $0x10] sm:$0xff] }
  0x44   :  { %1858 = vmatprep.subr.bf16.mxu1 %v2131_v13  ;;  %v110_v36 = vld [vmem:[#allocation3 + $0x58] sm:$0xff]  ;;  %v227_v40 = vpack.c.bf16 %v107_v38, %v99_v37  ;;  %v109_v42 = vld [vmem:[#allocation3 + $0x50] sm:$0xff]  ;;  %835 = vmatprep.mubr.bf16.mxu0 %v228_v35  ;;  %v2150_v44 = vld [vmem:[#allocation6 + $0x140] sm:$0xff]  }
  0x45   :  { %v230_v39 = vpack.c.bf16 %v110_v36, %v102_v34  ;;  %v229_v43 = vpack.c.bf16 %v109_v42, %v101_v41  ;;  %v2151_v45 = vld [vmem:[#allocation6 + $0x100] sm:$0xff]   ;;  %v116_v48 = vld [vmem:[#allocation3 + $0x88] sm:$0xff]  ;;  %v118_v50 = vld [vmem:[#allocation3 + $0x98] sm:$0xff] }
  0x46   :  { %1795 = vmatpush3.bf16.msra.mxu0 %v2132_v14  ;;  %v2152_v46 = vld [vmem:[#allocation6 + $0x1c0] sm:$0xff]   ;;  %v124_v49 = vld [vmem:[#allocation3 + $0xc8] sm:$0xff]  ;;  %v126_v51 = vld [vmem:[#allocation3 + $0xd8] sm:$0xff] }
  0x47   :  { %1859 = vmatpush3.bf16.msra.mxu1 %v2133_v15  ;;  %1796 = vmatprep.subr.bf16.mxu0 %v2134_v16  ;;  %v2153_v47 = vld [vmem:[#allocation6 + $0x180] sm:$0xff]   ;;  %v236_v52 = vpack.c.bf16 %v124_v49, %v116_v48  ;;  %v238_v53 = vpack.c.bf16 %v126_v51, %v118_v50  ;;  %v117_v56 = vld [vmem:[#allocation3 + $0x90] sm:$0xff]  ;;  %v2154_v60 = vld [vmem:[#allocation6 + $0x148] sm:$0xff]  }
  0x48   :  { %1860 = vmatprep.subr.bf16.mxu1 %v2135_v17  ;;  %932 = vmatprep.mubr.bf16.mxu1 %v230_v39  ;;  %v115_v54 = vld [vmem:[#allocation3 + $0x80] sm:$0xff]  ;;  %v125_v58 = vld [vmem:[#allocation3 + $0xd0] sm:$0xff]  ;;  %v2155_v61 = vld [vmem:[#allocation6 + $0x108] sm:$0xff]  }
  0x49   :  { %v123_v55 = vld [vmem:[#allocation3 + $0xc0] sm:$0xff]  ;;  %v237_v59 = vpack.c.bf16 %v125_v58, %v117_v56  ;;  %v2156_v62 = vld [vmem:[#allocation6 + $0x1c8] sm:$0xff]   ;;  %v134_v3 = vld [vmem:[#allocation3 + $0x118] sm:$0xff] }
  0x4a   :  { %1797 = vmatpush3.bf16.msra.mxu0 %v2136_v18  ;;  %v235_v57 = vpack.c.bf16 %v123_v55, %v115_v54  ;;  %v2157_v63 = vld [vmem:[#allocation6 + $0x188] sm:$0xff]   ;;  %v142_v4 = vld [vmem:[#allocation3 + $0x158] sm:$0xff]  ;;  %v131_v5 = vld [vmem:[#allocation3 + $0x100] sm:$0xff] }
  0x4b   :  { %1861 = vmatpush3.bf16.msra.mxu1 %v2137_v19  ;;  %1798 = vmatprep.subr.bf16.mxu0 %v2138_v20  ;;  %v132_v0 = vld [vmem:[#allocation3 + $0x108] sm:$0xff]  ;;  %v246_v6 = vpack.c.bf16 %v142_v4, %v134_v3  ;;  %v139_v7 = vld [vmem:[#allocation3 + $0x140] sm:$0xff]  ;;  %v133_v8 = vld [vmem:[#allocation3 + $0x110] sm:$0xff] }
  0x4c   :  { %1862 = vmatprep.subr.bf16.mxu1 %v2139_v21  ;;  %v140_v1 = vld [vmem:[#allocation3 + $0x148] sm:$0xff]  ;;  %v141_v9 = vld [vmem:[#allocation3 + $0x150] sm:$0xff]  ;;  %v243_v10 = vpack.c.bf16 %v139_v7, %v131_v5  ;;  %v150_v18 = vld [vmem:[#allocation3 + $0x198] sm:$0xff] }
  0x4d   :  { %v244_v2 = vpack.c.bf16 %v140_v1, %v132_v0  ;;  %v2158_v11 = vld [vmem:[#allocation6 + $0x150] sm:$0xff]   ;;  %v245_v12 = vpack.c.bf16 %v141_v9, %v133_v8  ;;  %v148_v16 = vld [vmem:[#allocation3 + $0x188] sm:$0xff]  ;;  %v158_v20 = vld [vmem:[#allocation3 + $0x1d8] sm:$0xff] }
  0x4e   :  { %1799 = vmatpush3.bf16.msra.mxu0 %v2140_v22  ;;  %v2159_v13 = vld [vmem:[#allocation6 + $0x110] sm:$0xff]   ;;  %v156_v17 = vld [vmem:[#allocation3 + $0x1c8] sm:$0xff]  ;;  %v147_v21 = vld [vmem:[#allocation3 + $0x180] sm:$0xff] }
  0x4f   :  { %1863 = vmatpush3.bf16.msra.mxu1 %v2141_v23  ;;  %1800 = vmatprep.subr.bf16.mxu0 %v2142_v24  ;;  %v2160_v14 = vld [vmem:[#allocation6 + $0x1d0] sm:$0xff]   ;;  %v252_v19 = vpack.c.bf16 %v156_v17, %v148_v16  ;;  %v155_v22 = vld [vmem:[#allocation3 + $0x1c0] sm:$0xff]  ;;  %v254_v23 = vpack.c.bf16 %v158_v20, %v150_v18  ;;  %v164_v32 = vld [vmem:[#allocation3 + $0x208] sm:$0xff] }
  0x50   :  { %1864 = vmatprep.subr.bf16.mxu1 %v2143_v25  ;;  %v2161_v15 = vld [vmem:[#allocation6 + $0x190] sm:$0xff]   ;;  %v172_v33 = vld [vmem:[#allocation3 + $0x248] sm:$0xff]  ;;  %v166_v34 = vld [vmem:[#allocation3 + $0x218] sm:$0xff] }
  0x51   :  { %v149_v24 = vld [vmem:[#allocation3 + $0x190] sm:$0xff]  ;;  %v174_v35 = vld [vmem:[#allocation3 + $0x258] sm:$0xff]  ;;  %v260_v36 = vpack.c.bf16 %v172_v33, %v164_v32  ;;  %v163_v38 = vld [vmem:[#allocation3 + $0x200] sm:$0xff] }
  0x52   :  { %1801 = vmatpush3.bf16.msra.mxu0 %v2144_v26  ;;  %v157_v25 = vld [vmem:[#allocation3 + $0x1d0] sm:$0xff]  ;;  %v2162_v26 = vld [vmem:[#allocation6 + $0x158] sm:$0xff]   ;;  %v262_v37 = vpack.c.bf16 %v174_v35, %v166_v34  ;;  %v171_v39 = vld [vmem:[#allocation3 + $0x240] sm:$0xff] }
  0x53   :  { %1865 = vmatpush3.bf16.msra.mxu1 %v2145_v27  ;;  %1802 = vmatprep.subr.bf16.mxu0 %v2146_v28  ;;  %v251_v27 = vpack.c.bf16 %v155_v22, %v147_v21  ;;  %v2163_v28 = vld [vmem:[#allocation6 + $0x118] sm:$0xff]   ;;  %v173_v41 = vld [vmem:[#allocation3 + $0x250] sm:$0xff]  ;;  %v2166_v42 = vld [vmem:[#allocation6 + $0x160] sm:$0xff]  }
  0x54   :  { %1866 = vmatprep.subr.bf16.mxu1 %v2147_v29  ;;  %v253_v29 = vpack.c.bf16 %v157_v25, %v149_v24  ;;  %v180_v48 = vld [vmem:[#allocation3 + $0x288] sm:$0xff]  ;;  %v182_v51 = vld [vmem:[#allocation3 + $0x298] sm:$0xff]  ;;  %v179_v54 = vld [vmem:[#allocation3 + $0x280] sm:$0xff] }
  0x55   :  { %v188_v49 = vld [vmem:[#allocation3 + $0x2c8] sm:$0xff]  ;;  %v187_v55 = vld [vmem:[#allocation3 + $0x2c0] sm:$0xff]  ;;  %v181_v56 = vld [vmem:[#allocation3 + $0x290] sm:$0xff] }
  0x56   :  { %1803 = vmatpush3.bf16.msra.mxu0 %v2148_v30  ;;  %v2164_v30 = vld [vmem:[#allocation6 + $0x1d8] sm:$0xff]   ;;  %v268_v50 = vpack.c.bf16 %v188_v49, %v180_v48  ;;  %v2170_v58 = vld [vmem:[#allocation6 + $0x168] sm:$0xff]   ;;  %v203_v7 = vld [vmem:[#allocation3 + $0x340] sm:$0xff] }
  0x57   :  { %1867 = vmatpush3.bf16.msra.mxu1 %v2149_v31  ;;  %1916 = vmatprep.subr.bf16.mxu0 %v2150_v44  ;;  %v2165_v31 = vld [vmem:[#allocation6 + $0x198] sm:$0xff]   ;;  %v259_v44 = vpack.c.bf16 %v171_v39, %v163_v38  ;;  %v204_v0 = vld [vmem:[#allocation3 + $0x348] sm:$0xff]  ;;  %v2174_v8 = vld [vmem:[#allocation6 + $0x170] sm:$0xff]  }
  0x58   :  { %1980 = vmatprep.subr.bf16.mxu1 %v2152_v46  ;;  %v198_v1 = vld [vmem:[#allocation3 + $0x318] sm:$0xff]  ;;  %v197_v9 = vld [vmem:[#allocation3 + $0x310] sm:$0xff]  ;;  %v103_v38 = vld [vmem:[#allocation3 + $0x20] sm:$0xff] }
  0x59   :  { %836 = vmatmul.mubr.bf16.vlgmr.msra.gmra.mrb[0].mxu0 %v227_v40  ;;  %v165_v40 = vld [vmem:[#allocation3 + $0x210] sm:$0xff]  ;;  %v206_v4 = vld [vmem:[#allocation3 + $0x358] sm:$0xff]  ;;  %v111_v39 = vld [vmem:[#allocation3 + $0x60] sm:$0xff] }
  0x5a   :  { %933 = vmatmul.mubr.bf16.vlgmr.msra.gmra.mrb[0].mxu1 %v229_v43  ;;  %1917 = vmatpush3.bf16.msra.mxu0 %v2151_v45  ;;  %v2167_v43 = vld [vmem:[#allocation6 + $0x120] sm:$0xff]   ;;  %v261_v46 = vpack.c.bf16 %v173_v41, %v165_v40  ;;  %v278_v5 = vpack.c.bf16 %v206_v4, %v198_v1  ;;  %v214_v16 = vld [vmem:[#allocation3 + $0x398] sm:$0xff]  ;;  %v105_v40 = vld [vmem:[#allocation3 + $0x30] sm:$0xff] }
  0x5b   :  { %1981 = vmatpush3.bf16.msra.mxu1 %v2153_v47  ;;  %843 = vmatprep.mubr.bf16.mxu0 %v236_v52  ;;  %v2168_v45 = vld [vmem:[#allocation6 + $0x1e0] sm:$0xff]   ;;  %v190_v52 = vld [vmem:[#allocation3 + $0x2d8] sm:$0xff]  ;;  %v113_v41 = vld [vmem:[#allocation3 + $0x70] sm:$0xff] }
  0x5c   :  { %940 = vmatprep.mubr.bf16.mxu1 %v238_v53  ;;  %1918 = vmatprep.subr.bf16.mxu0 %v2154_v60  ;;  %v2169_v47 = vld [vmem:[#allocation6 + $0x1a0] sm:$0xff]   ;;  %v270_v53 = vpack.c.bf16 %v190_v52, %v182_v51  ;;  %v2172_v60 = vld [vmem:[#allocation6 + $0x1e8] sm:$0xff]   ;;  %v222_v17 = vld [vmem:[#allocation3 + $0x3d8] sm:$0xff] }
  0x5d   :  { %1982 = vmatprep.subr.bf16.mxu1 %v2156_v62  ;;  %v267_v62 = vpack.c.bf16 %v187_v55, %v179_v54  ;;  %v286_v21 = vpack.c.bf16 %v222_v17, %v214_v16  ;;  %v2178_v22 = vld [vmem:[#allocation6 + $0x178] sm:$0xff]   ;;  %v127_v51 = vld [vmem:[#allocation3 + $0xe0] sm:$0xff]  ;;  %v121_v52 = vld [vmem:[#allocation3 + $0xb0] sm:$0xff] }
  0x5e   :  { %1919 = vmatpush3.bf16.msra.mxu0 %v2155_v61  ;;  %v2173_v61 = vld [vmem:[#allocation6 + $0x1a8] sm:$0xff]   ;;  %v2179_v24 = vld [vmem:[#allocation6 + $0x138] sm:$0xff]   ;;  %v145_v1 = vld [vmem:[#allocation3 + $0x170] sm:$0xff] }
  0x5f   :  { %1983 = vmatpush3.bf16.msra.mxu1 %v2157_v63  ;;  %1920 = vmatprep.subr.bf16.mxu0 %v2158_v11  ;;  %v196_v63 = vld [vmem:[#allocation3 + $0x308] sm:$0xff]  ;;  %v2175_v11 = vld [vmem:[#allocation6 + $0x130] sm:$0xff]   ;;  %v2180_v25 = vld [vmem:[#allocation6 + $0x1f8] sm:$0xff]  }
  0x60   :  { %1984 = vmatprep.subr.bf16.mxu1 %v2160_v14  ;;  %v276_v3 = vpack.c.bf16 %v204_v0, %v196_v63  ;;  %v212_v14 = vld [vmem:[#allocation3 + $0x388] sm:$0xff]  ;;  %v106_v32 = vld [vmem:[#allocation3 + $0x38] sm:$0xff]  ;;  %v143_v63 = vld [vmem:[#allocation3 + $0x160] sm:$0xff] }
  0x61   :  { %844 = vmatmul.mubr.bf16.gmra.mrb[4].mxu0 %v235_v57  ;;  %v189_v57 = vld [vmem:[#allocation3 + $0x2d0] sm:$0xff]  ;;  %v114_v33 = vld [vmem:[#allocation3 + $0x78] sm:$0xff]  ;;  %v136_v54 = vld [vmem:[#allocation3 + $0x128] sm:$0xff] }
  0x62   :  { %941 = vmatmul.mubr.bf16.gmra.mrb[4].mxu1 %v237_v59  ;;  %851 = vmatprep.mubr.bf16.mxu0 %v244_v2  ;;  %v2171_v59 = vld [vmem:[#allocation6 + $0x128] sm:$0xff]   ;;  %v269_v2 = vpack.c.bf16 %v189_v57, %v181_v56  ;;  %v138_v56 = vld [vmem:[#allocation3 + $0x138] sm:$0xff]  ;;  %v137_v0 = vld [vmem:[#allocation3 + $0x130] sm:$0xff] }
  0x63   :  { %948 = vmatprep.mubr.bf16.mxu1 %v246_v6  ;;  %1921 = vmatpush3.bf16.msra.mxu0 %v2159_v13  ;;  %v195_v6 = vld [vmem:[#allocation3 + $0x300] sm:$0xff]  ;;  %v2177_v13 = vld [vmem:[#allocation6 + $0x1b0] sm:$0xff]   ;;  %v144_v55 = vld [vmem:[#allocation3 + $0x168] sm:$0xff] }
  0x64   :  { %1985 = vmatpush3.bf16.msra.mxu1 %v2161_v15  ;;  %1922 = vmatprep.subr.bf16.mxu0 %v2162_v26  ;;  %v220_v15 = vld [vmem:[#allocation3 + $0x3c8] sm:$0xff]  ;;  %v275_v18 = vpack.c.bf16 %v203_v7, %v195_v6  ;;  %v219_v26 = vld [vmem:[#allocation3 + $0x3c0] sm:$0xff]  ;;  %v146_v57 = vld [vmem:[#allocation3 + $0x178] sm:$0xff]  ;;  %v249_v7 = vpack.c.bf16 %v145_v1, %v137_v0 }
  0x65   :  { %1986 = vmatprep.subr.bf16.mxu1 %v2164_v30  ;;  %v284_v20 = vpack.c.bf16 %v220_v15, %v212_v14  ;;  %v104_v30 = vld [vmem:[#allocation3 + $0x28] sm:$0xff]  ;;  %v154_v4 = vld [vmem:[#allocation3 + $0x1b8] sm:$0xff] }
  0x66   :  { %v168_v14 = vld [vmem:[#allocation3 + $0x228] sm:$0xff]  ;;  %v170_v16 = vld [vmem:[#allocation3 + $0x238] sm:$0xff] }
  0x67   :  { %1923 = vmatpush3.bf16.msra.mxu0 %v2163_v28  ;;  %v2181_v28 = vld [vmem:[#allocation6 + $0x1b8] sm:$0xff]   ;;  %v176_v15 = vld [vmem:[#allocation3 + $0x268] sm:$0xff] }
  0x68   :  { %1987 = vmatpush3.bf16.msra.mxu1 %v2165_v31  ;;  %1924 = vmatprep.subr.bf16.mxu0 %v2166_v42  ;;  %v112_v31 = vld [vmem:[#allocation3 + $0x68] sm:$0xff]  ;;  %v178_v17 = vld [vmem:[#allocation3 + $0x278] sm:$0xff] }
  0x69   :  { %852 = vmatmul.mubr.bf16.gmra.mrb[8].mxu0 %v243_v10  ;;  %1988 = vmatprep.subr.bf16.mxu1 %v2168_v45  ;;  %v205_v10 = vld [vmem:[#allocation3 + $0x350] sm:$0xff]  ;;  %v120_v42 = vld [vmem:[#allocation3 + $0xa8] sm:$0xff]  ;;  %v130_v45 = vld [vmem:[#allocation3 + $0xf8] sm:$0xff] }
  0x6a   :  { %949 = vmatmul.mubr.bf16.gmra.mrb[8].mxu1 %v245_v12  ;;  %859 = vmatprep.mubr.bf16.mxu0 %v252_v19  ;;  %v2176_v12 = vld [vmem:[#allocation6 + $0x1f0] sm:$0xff]   ;;  %v277_v19 = vpack.c.bf16 %v205_v10, %v197_v9  ;;  %v151_v10 = vld [vmem:[#allocation3 + $0x1a0] sm:$0xff] }
  0x6b   :  { %956 = vmatprep.mubr.bf16.mxu1 %v254_v23  ;;  %1925 = vmatpush3.bf16.msra.mxu0 %v2167_v43  ;;  %v211_v23 = vld [vmem:[#allocation3 + $0x380] sm:$0xff]  ;;  %v128_v43 = vld [vmem:[#allocation3 + $0xe8] sm:$0xff] }
  0x6c   :  { %1989 = vmatpush3.bf16.msra.mxu1 %v2169_v47  ;;  %1926 = vmatprep.subr.bf16.mxu0 %v2170_v58  ;;  %v283_v34 = vpack.c.bf16 %v219_v26, %v211_v23  ;;  %v233_v47 = vpack.c.bf16 %v113_v41, %v105_v40  ;;  %v240_v48 = vpack.c.bf16 %v128_v43, %v120_v42  ;;  %v175_v23 = vld [vmem:[#allocation3 + $0x260] sm:$0xff]  ;;  %v184_v26 = vld [vmem:[#allocation3 + $0x2a8] sm:$0xff]  ;;  %v202_v40 = vld [vmem:[#allocation3 + $0x338] sm:$0xff] }
  0x6d   :  { %1990 = vmatprep.subr.bf16.mxu1 %v2172_v60  ;;  %v248_v60 = vpack.c.bf16 %v144_v55, %v136_v54  ;;  %v210_v41 = vld [vmem:[#allocation3 + $0x378] sm:$0xff] }
  0x6f   :  { %1927 = vmatpush3.bf16.msra.mxu0 %v2171_v59 }
  0x70   :  { %1991 = vmatpush3.bf16.msra.mxu1 %v2173_v61  ;;  %1928 = vmatprep.subr.bf16.mxu0 %v2174_v8  ;;  %v250_v61 = vpack.c.bf16 %v146_v57, %v138_v56 }
  0x71   :  { %860 = vmatmul.mubr.bf16.gmra.mrb[12].mxu0 %v251_v27  ;;  %1992 = vmatprep.subr.bf16.mxu1 %v2176_v12  ;;  %v213_v27 = vld [vmem:[#allocation3 + $0x390] sm:$0xff] }
  0x72   :  { %957 = vmatmul.mubr.bf16.gmra.mrb[12].mxu1 %v253_v29  ;;  %867 = vmatprep.mubr.bf16.mxu0 %v260_v36  ;;  %v221_v29 = vld [vmem:[#allocation3 + $0x3d0] sm:$0xff]  ;;  %v232_v36 = vpack.c.bf16 %v112_v31, %v104_v30 }
  0x73   :  { %964 = vmatprep.mubr.bf16.mxu1 %v262_v37  ;;  %1929 = vmatpush3.bf16.msra.mxu0 %v2175_v11  ;;  %v285_v35 = vpack.c.bf16 %v221_v29, %v213_v27  ;;  %v234_v37 = vpack.c.bf16 %v114_v33, %v106_v32  ;;  %v159_v11 = vld [vmem:[#allocation3 + $0x1e0] sm:$0xff]  ;;  %v153_v12 = vld [vmem:[#allocation3 + $0x1b0] sm:$0xff]  ;;  %v192_v27 = vld [vmem:[#allocation3 + $0x2e8] sm:$0xff] }
  0x74   :  { %1993 = vmatpush3.bf16.msra.mxu1 %v2177_v13  ;;  %1930 = vmatprep.subr.bf16.mxu0 %v2178_v22  ;;  %v161_v13 = vld [vmem:[#allocation3 + $0x1f0] sm:$0xff]  ;;  %v167_v22 = vld [vmem:[#allocation3 + $0x220] sm:$0xff]  ;;  %v194_v29 = vld [vmem:[#allocation3 + $0x2f8] sm:$0xff]  ;;  %v272_v32 = vpack.c.bf16 %v192_v27, %v184_v26 }
  0x75   :  { %1994 = vmatprep.subr.bf16.mxu1 %v2180_v25  ;;  %v177_v25 = vld [vmem:[#allocation3 + $0x270] sm:$0xff]  ;;  %v263_v30 = vpack.c.bf16 %v175_v23, %v167_v22 }
  0x77   :  { %1931 = vmatpush3.bf16.msra.mxu0 %v2179_v24  ;;  %v169_v24 = vld [vmem:[#allocation3 + $0x230] sm:$0xff] }
  0x78   :  { %1995 = vmatpush3.bf16.msra.mxu1 %v2181_v28  ;;  %v186_v28 = vld [vmem:[#allocation3 + $0x2b8] sm:$0xff]  ;;  %v265_v31 = vpack.c.bf16 %v177_v25, %v169_v24 }
  0x79   :  { %868 = vmatmul.mubr.bf16.gmra.mrb[16].mxu0 %v259_v44  ;;  %v122_v44 = vld [vmem:[#allocation3 + $0xb8] sm:$0xff]  ;;  %v274_v33 = vpack.c.bf16 %v194_v29, %v186_v28 }
  0x7a   :  { %965 = vmatmul.mubr.bf16.gmra.mrb[16].mxu1 %v261_v46  ;;  %875 = vmatprep.mubr.bf16.mxu0 %v268_v50  ;;  %v231_v46 = vpack.c.bf16 %v111_v39, %v103_v38  ;;  %v242_v49 = vpack.c.bf16 %v130_v45, %v122_v44  ;;  %v119_v50 = vld [vmem:[#allocation3 + $0xa0] sm:$0xff]  ;;  %v200_v38 = vld [vmem:[#allocation3 + $0x328] sm:$0xff]  ;;  %v282_v45 = vpack.c.bf16 %v210_v41, %v202_v40 }
  0x7b   :  { %972 = vmatprep.mubr.bf16.mxu1 %v270_v53  ;;  %v129_v53 = vld [vmem:[#allocation3 + $0xf0] sm:$0xff]  ;;  %v239_v58 = vpack.c.bf16 %v127_v51, %v119_v50  ;;  %v208_v39 = vld [vmem:[#allocation3 + $0x368] sm:$0xff] }
  0x7c   :  { %v241_v59 = vpack.c.bf16 %v129_v53, %v121_v52  ;;  %v280_v44 = vpack.c.bf16 %v208_v39, %v200_v38  ;;  %v216_v50 = vld [vmem:[#allocation3 + $0x3a8] sm:$0xff]  ;;  %v218_v52 = vld [vmem:[#allocation3 + $0x3b8] sm:$0xff] }
  0x7d   :  { %v224_v51 = vld [vmem:[#allocation3 + $0x3e8] sm:$0xff]  ;;  %v226_v53 = vld [vmem:[#allocation3 + $0x3f8] sm:$0xff] }
  0x7e   :  { %v288_v56 = vpack.c.bf16 %v224_v51, %v216_v50  ;;  %v290_v57 = vpack.c.bf16 %v226_v53, %v218_v52 }
  0x81   :  { %876 = vmatmul.mubr.bf16.gmra.mrb[20].mxu0 %v267_v62  ;;  %v135_v62 = vld [vmem:[#allocation3 + $0x120] sm:$0xff] }
  0x82   :  { %973 = vmatmul.mubr.bf16.gmra.mrb[20].mxu1 %v269_v2  ;;  %883 = vmatprep.mubr.bf16.mxu0 %v276_v3  ;;  %v152_v2 = vld [vmem:[#allocation3 + $0x1a8] sm:$0xff]  ;;  %v247_v6 = vpack.c.bf16 %v143_v63, %v135_v62 }
  0x83   :  { %980 = vmatprep.mubr.bf16.mxu1 %v278_v5  ;;  %v160_v3 = vld [vmem:[#allocation3 + $0x1e8] sm:$0xff]  ;;  %v162_v5 = vld [vmem:[#allocation3 + $0x1f8] sm:$0xff] }
  0x84   :  { %v256_v8 = vpack.c.bf16 %v160_v3, %v152_v2  ;;  %v258_v9 = vpack.c.bf16 %v162_v5, %v154_v4 }
  0x89   :  { %884 = vmatmul.mubr.bf16.gmra.mrb[24].mxu0 %v275_v18  ;;  %v255_v18 = vpack.c.bf16 %v159_v11, %v151_v10  ;;  %v2182_v11 = vld [vmem:[#allocation8] sm:$0xff]  }
  0x8a   :  { %981 = vmatmul.mubr.bf16.gmra.mrb[24].mxu1 %v277_v19  ;;  %891 = vmatprep.mubr.bf16.mxu0 %v284_v20  ;;  %v257_v19 = vpack.c.bf16 %v161_v13, %v153_v12  ;;  %v264_v20 = vpack.c.bf16 %v176_v15, %v168_v14  ;;  %v2183_v12 = vld [vmem:[#allocation8 + $0x8] sm:$0xff]  }
  0x8b   :  { %988 = vmatprep.mubr.bf16.mxu1 %v286_v21  ;;  %v266_v21 = vpack.c.bf16 %v178_v17, %v170_v16  ;;  %2060 = vmatprep.subr.bf16.mxu0 %v2182_v11 }
  0x8c   :  { %2092 = vmatprep.subr.bf16.mxu1 %v2182_v11 }
  0x91   :  { %892 = vmatmul.mubr.bf16.gmra.mrb[28].mxu0 %v283_v34  ;;  %v183_v34 = vld [vmem:[#allocation3 + $0x2a0] sm:$0xff] }
  0x92   :  { %989 = vmatmul.mubr.bf16.gmra.mrb[28].mxu1 %v285_v35  ;;  %1029 = vmatprep.mubr.bf16.mxu0 %v232_v36  ;;  %v191_v35 = vld [vmem:[#allocation3 + $0x2e0] sm:$0xff]  ;;  %v185_v36 = vld [vmem:[#allocation3 + $0x2b0] sm:$0xff] }
  0x93   :  { %1126 = vmatprep.mubr.bf16.mxu1 %v234_v37  ;;  %v193_v37 = vld [vmem:[#allocation3 + $0x2f0] sm:$0xff]  ;;  %v271_v42 = vpack.c.bf16 %v191_v35, %v183_v34 }
  0x94   :  { %v273_v43 = vpack.c.bf16 %v193_v37, %v185_v36 }
  0x99   :  { %1030 = vmatmul.mubr.bf16.vlgmr.msra.gmra.mrb[32].mxu0 %v231_v46  ;;  %v199_v46 = vld [vmem:[#allocation3 + $0x320] sm:$0xff] }
  0x9a   :  { %1127 = vmatmul.mubr.bf16.vlgmr.msra.gmra.mrb[32].mxu1 %v233_v47  ;;  %1037 = vmatprep.mubr.bf16.mxu0 %v240_v48  ;;  %v207_v47 = vld [vmem:[#allocation3 + $0x360] sm:$0xff]  ;;  %v201_v48 = vld [vmem:[#allocation3 + $0x330] sm:$0xff] }
  0x9b   :  { %1134 = vmatprep.mubr.bf16.mxu1 %v242_v49  ;;  %v209_v49 = vld [vmem:[#allocation3 + $0x370] sm:$0xff]  ;;  %v279_v54 = vpack.c.bf16 %v207_v47, %v199_v46  ;;  %2061 = vmatpush3.bf16.msra.mxu0 %v2182_v11 }
  0x9c   :  { %v281_v55 = vpack.c.bf16 %v209_v49, %v201_v48  ;;  %2100 = vmatpush3.bf16.msra.mxu1 %v2182_v11  ;;  %2062 = vmatprep.subr.bf16.mxu0 %v2183_v12 }
  0x9d   :  { %2093 = vmatprep.subr.bf16.mxu1 %v2183_v12 }
  0x9f   :  { %2063 = vmatpush3.bf16.msra.mxu0 %v2183_v12 }
  0xa0   :  { %2101 = vmatpush3.bf16.msra.mxu1 %v2183_v12 }
  0xa1   :  { %1038 = vmatmul.mubr.bf16.gmra.mrb[36].mxu0 %v239_v58  ;;  %v215_v58 = vld [vmem:[#allocation3 + $0x3a0] sm:$0xff] }
  0xa2   :  { %1135 = vmatmul.mubr.bf16.gmra.mrb[36].mxu1 %v241_v59  ;;  %1045 = vmatprep.mubr.bf16.mxu0 %v248_v60  ;;  %v223_v59 = vld [vmem:[#allocation3 + $0x3e0] sm:$0xff]  ;;  %v217_v60 = vld [vmem:[#allocation3 + $0x3b0] sm:$0xff] }
  0xa3   :  { %1142 = vmatprep.mubr.bf16.mxu1 %v250_v61  ;;  %v225_v61 = vld [vmem:[#allocation3 + $0x3f0] sm:$0xff]  ;;  %v287_v62 = vpack.c.bf16 %v223_v59, %v215_v58 }
  0xa4   :  { %v289_v63 = vpack.c.bf16 %v225_v61, %v217_v60 }
  0xa9   :  { %1046 = vmatmul.mubr.bf16.gmra.mrb[40].mxu0 %v247_v6 }
  0xaa   :  { %1143 = vmatmul.mubr.bf16.gmra.mrb[40].mxu1 %v249_v7  ;;  %1053 = vmatprep.mubr.bf16.mxu0 %v256_v8 }
  0xab   :  { %1150 = vmatprep.mubr.bf16.mxu1 %v258_v9 }
  0xb1   :  { %1054 = vmatmul.mubr.bf16.gmra.mrb[44].mxu0 %v255_v18 }
  0xb2   :  { %1151 = vmatmul.mubr.bf16.gmra.mrb[44].mxu1 %v257_v19  ;;  %1061 = vmatprep.mubr.bf16.mxu0 %v264_v20 }
  0xb3   :  { %1158 = vmatprep.mubr.bf16.mxu1 %v266_v21 }
  0xb9   :  { %1062 = vmatmul.mubr.bf16.gmra.mrb[48].mxu0 %v263_v30 }
  0xba   :  { %1159 = vmatmul.mubr.bf16.gmra.mrb[48].mxu1 %v265_v31  ;;  %1069 = vmatprep.mubr.bf16.mxu0 %v272_v32 }
  0xbb   :  { %1166 = vmatprep.mubr.bf16.mxu1 %v274_v33 }
  0xc1   :  { %1070 = vmatmul.mubr.bf16.gmra.mrb[52].mxu0 %v271_v42 }
  0xc2   :  { %1167 = vmatmul.mubr.bf16.gmra.mrb[52].mxu1 %v273_v43  ;;  %1077 = vmatprep.mubr.bf16.mxu0 %v280_v44 }
  0xc3   :  { %1174 = vmatprep.mubr.bf16.mxu1 %v282_v45 }
  0xc9   :  { %1078 = vmatmul.mubr.bf16.gmra.mrb[56].mxu0 %v279_v54 }
  0xca   :  { %1175 = vmatmul.mubr.bf16.gmra.mrb[56].mxu1 %v281_v55  ;;  %1085 = vmatprep.mubr.bf16.mxu0 %v288_v56 }
  0xcb   :  { %1182 = vmatprep.mubr.bf16.mxu1 %v290_v57 }
  0xd1   :  { %1086 = vmatmul.mubr.bf16.gmra.mrb[60].mxu0 %v287_v62 }
  0xd2   :  { %1183 = vmatmul.mubr.bf16.gmra.mrb[60].mxu1 %v289_v63 }
 0x12c   :  { %v1804_v0 = vpop.f32.mrb[0].mxu0 }
 0x12d   :  { %v1868_v1 = vpop.f32.mrb[0].mxu1  ;;  %v1805_v2 = vpop.f32.mrb[1].mxu0 }
 0x12e   :  { %v1806_v3 = vadd.f32 %v1805_v2, %v1804_v0  ;;  %v1869_v4 = vpop.f32.mrb[1].mxu1  ;;  %v1807_v5 = vpop.f32.mrb[2].mxu0 }
 0x12f   :  { %v1870_v6 = vadd.f32 %v1869_v4, %v1868_v1  ;;  %v1871_v7 = vpop.f32.mrb[2].mxu1  ;;  %v1808_v8 = vpop.f32.mrb[3].mxu0 }
 0x130   :  { %v1809_v9 = vadd.f32 %v1808_v8, %v1807_v5  ;;  %v1872_v10 = vpop.f32.mrb[3].mxu1 }
 0x131   :  { %v2423_v13 = vadd.f32 %v1870_v6, %v1806_v3  ;;  %v1873_v14 = vadd.f32 %v1872_v10, %v1871_v7 }
 0x133   :  { %v2425_v15 = vadd.f32 %v1873_v14, %v1809_v9 }
 0x134   :  { %v1810_v16 = vpop.f32.mrb[4].mxu0 }
 0x135   :  { %v1874_v17 = vpop.f32.mrb[4].mxu1  ;;  %v1811_v18 = vpop.f32.mrb[5].mxu0 }
 0x136   :  { %v1812_v19 = vadd.f32 %v1811_v18, %v1810_v16  ;;  %v1875_v20 = vpop.f32.mrb[5].mxu1  ;;  %v1813_v21 = vpop.f32.mrb[6].mxu0 }
 0x137   :  { %v1876_v22 = vadd.f32 %v1875_v20, %v1874_v17  ;;  %v1877_v23 = vpop.f32.mrb[6].mxu1  ;;  %v1814_v24 = vpop.f32.mrb[7].mxu0 }
 0x138   :  { %v1815_v25 = vadd.f32 %v1814_v24, %v1813_v21  ;;  %v1878_v26 = vpop.f32.mrb[7].mxu1 }
 0x139   :  { %v2427_v27 = vadd.f32 %v1876_v22, %v1812_v19  ;;  %v1879_v28 = vadd.f32 %v1878_v26, %v1877_v23 }
 0x13b   :  { %v2429_v29 = vadd.f32 %v1879_v28, %v1815_v25 }
 0x13c   :  { %v1816_v30 = vpop.f32.mrb[8].mxu0 }
 0x13d   :  { %v1880_v31 = vpop.f32.mrb[8].mxu1  ;;  %v1817_v32 = vpop.f32.mrb[9].mxu0 }
 0x13e   :  { %v1818_v33 = vadd.f32 %v1817_v32, %v1816_v30  ;;  %v1881_v34 = vpop.f32.mrb[9].mxu1  ;;  %v1819_v35 = vpop.f32.mrb[10].mxu0 }
 0x13f   :  { %v1882_v36 = vadd.f32 %v1881_v34, %v1880_v31  ;;  %v1883_v37 = vpop.f32.mrb[10].mxu1  ;;  %v1820_v38 = vpop.f32.mrb[11].mxu0 }
 0x140   :  { %v1821_v39 = vadd.f32 %v1820_v38, %v1819_v35  ;;  %v1884_v40 = vpop.f32.mrb[11].mxu1 }
 0x141   :  { %v2431_v41 = vadd.f32 %v1882_v36, %v1818_v33  ;;  %v1885_v42 = vadd.f32 %v1884_v40, %v1883_v37 }
 0x143   :  { %v2433_v43 = vadd.f32 %v1885_v42, %v1821_v39 }
 0x144   :  { %v1822_v44 = vpop.f32.mrb[12].mxu0 }
 0x145   :  { %v1886_v45 = vpop.f32.mrb[12].mxu1  ;;  %v1823_v46 = vpop.f32.mrb[13].mxu0 }
 0x146   :  { %v1824_v47 = vadd.f32 %v1823_v46, %v1822_v44  ;;  %v1887_v48 = vpop.f32.mrb[13].mxu1  ;;  %v1825_v49 = vpop.f32.mrb[14].mxu0 }
 0x147   :  { %v1888_v50 = vadd.f32 %v1887_v48, %v1886_v45  ;;  %v1889_v51 = vpop.f32.mrb[14].mxu1  ;;  %v1826_v52 = vpop.f32.mrb[15].mxu0 }
 0x148   :  { %v1827_v53 = vadd.f32 %v1826_v52, %v1825_v49  ;;  %v1890_v54 = vpop.f32.mrb[15].mxu1 }
 0x149   :  { %v2435_v55 = vadd.f32 %v1888_v50, %v1824_v47  ;;  %v1891_v56 = vadd.f32 %v1890_v54, %v1889_v51 }
 0x14b   :  { %v2437_v57 = vadd.f32 %v1891_v56, %v1827_v53 }
 0x14c   :  { %v1828_v58 = vpop.f32.mrb[16].mxu0 }
 0x14d   :  { %v1892_v59 = vpop.f32.mrb[16].mxu1  ;;  %v1829_v60 = vpop.f32.mrb[17].mxu0 }
 0x14e   :  { %v1830_v61 = vadd.f32 %v1829_v60, %v1828_v58  ;;  %v1893_v62 = vpop.f32.mrb[17].mxu1  ;;  %v1831_v63 = vpop.f32.mrb[18].mxu0 }
 0x14f   :  { %v1894_v0 = vadd.f32 %v1893_v62, %v1892_v59  ;;  %v1895_v1 = vpop.f32.mrb[18].mxu1  ;;  %v1832_v2 = vpop.f32.mrb[19].mxu0 }
 0x150   :  { %v1833_v3 = vadd.f32 %v1832_v2, %v1831_v63  ;;  %v1896_v4 = vpop.f32.mrb[19].mxu1 }
 0x151   :  { %v2439_v5 = vadd.f32 %v1894_v0, %v1830_v61  ;;  %v1897_v6 = vadd.f32 %v1896_v4, %v1895_v1 }
 0x153   :  { %v2441_v7 = vadd.f32 %v1897_v6, %v1833_v3 }
 0x154   :  { %v1834_v8 = vpop.f32.mrb[20].mxu0 }
 0x155   :  { %v1898_v9 = vpop.f32.mrb[20].mxu1  ;;  %v1835_v10 = vpop.f32.mrb[21].mxu0 }
 0x156   :  { %v1836_v11 = vadd.f32 %v1835_v10, %v1834_v8  ;;  %v1899_v12 = vpop.f32.mrb[21].mxu1  ;;  %v1837_v14 = vpop.f32.mrb[22].mxu0 }
 0x157   :  { %v1900_v16 = vadd.f32 %v1899_v12, %v1898_v9  ;;  %v1901_v17 = vpop.f32.mrb[22].mxu1  ;;  %v1838_v18 = vpop.f32.mrb[23].mxu0 }
 0x158   :  { %v1839_v19 = vadd.f32 %v1838_v18, %v1837_v14  ;;  %v1902_v20 = vpop.f32.mrb[23].mxu1 }
 0x159   :  { %v2443_v21 = vadd.f32 %v1900_v16, %v1836_v11  ;;  %v1903_v22 = vadd.f32 %v1902_v20, %v1901_v17 }
 0x15b   :  { %v2445_v23 = vadd.f32 %v1903_v22, %v1839_v19 }
 0x15c   :  { %v1840_v24 = vpop.f32.mrb[24].mxu0 }
 0x15d   :  { %v1904_v25 = vpop.f32.mrb[24].mxu1  ;;  %v1841_v26 = vpop.f32.mrb[25].mxu0 }
 0x15e   :  { %v1842_v28 = vadd.f32 %v1841_v26, %v1840_v24  ;;  %v1905_v30 = vpop.f32.mrb[25].mxu1  ;;  %v1843_v31 = vpop.f32.mrb[26].mxu0 }
 0x15f   :  { %v1906_v32 = vadd.f32 %v1905_v30, %v1904_v25  ;;  %v1907_v33 = vpop.f32.mrb[26].mxu1  ;;  %v1844_v34 = vpop.f32.mrb[27].mxu0 }
 0x160   :  { %v1845_v35 = vadd.f32 %v1844_v34, %v1843_v31  ;;  %v1908_v36 = vpop.f32.mrb[27].mxu1 }
 0x161   :  { %v2447_v37 = vadd.f32 %v1906_v32, %v1842_v28  ;;  %v1909_v38 = vadd.f32 %v1908_v36, %v1907_v33 }
 0x163   :  { %v2449_v39 = vadd.f32 %v1909_v38, %v1845_v35 }
 0x164   :  { %v1846_v40 = vpop.f32.mrb[28].mxu0 }
 0x165   :  { %v1910_v42 = vpop.f32.mrb[28].mxu1  ;;  %v1847_v44 = vpop.f32.mrb[29].mxu0 }
 0x166   :  { %v1848_v45 = vadd.f32 %v1847_v44, %v1846_v40  ;;  %v1911_v46 = vpop.f32.mrb[29].mxu1  ;;  %v1849_v47 = vpop.f32.mrb[30].mxu0 }
 0x167   :  { %v1912_v48 = vadd.f32 %v1911_v46, %v1910_v42  ;;  %v1913_v49 = vpop.f32.mrb[30].mxu1  ;;  %v1850_v50 = vpop.f32.mrb[31].mxu0 }
 0x168   :  { %v1851_v51 = vadd.f32 %v1850_v50, %v1849_v47  ;;  %v1914_v52 = vpop.f32.mrb[31].mxu1 }
 0x169   :  { %v2451_v53 = vadd.f32 %v1912_v48, %v1848_v45  ;;  %v1915_v54 = vadd.f32 %v1914_v52, %v1913_v49 }
 0x16b   :  { %v2453_v56 = vadd.f32 %v1915_v54, %v1851_v51 }
 0x16c   :  { %v1932_v58 = vpop.f32.mrb[32].mxu0 }
 0x16d   :  { %v1996_v59 = vpop.f32.mrb[32].mxu1  ;;  %v1933_v60 = vpop.f32.mrb[33].mxu0 }
 0x16e   :  { %v1934_v61 = vadd.f32 %v1933_v60, %v1932_v58  ;;  %v1997_v62 = vpop.f32.mrb[33].mxu1  ;;  %v1935_v63 = vpop.f32.mrb[34].mxu0 }
 0x16f   :  { %v1998_v0 = vadd.f32 %v1997_v62, %v1996_v59  ;;  %v1999_v1 = vpop.f32.mrb[34].mxu1  ;;  %v1936_v2 = vpop.f32.mrb[35].mxu0 }
 0x170   :  { %v1032_v3 = vadd.f32 %v1934_v61, %v2423_v13  ;;  %v1937_v4 = vadd.f32 %v1936_v2, %v1935_v63  ;;  %v2000_v6 = vpop.f32.mrb[35].mxu1 }
 0x171   :  { %v2001_v8 = vadd.f32 %v2000_v6, %v1999_v1  ;;  %v2184_v1 = vld [vmem:[#allocation8 + $0x10] sm:$0xff]  }
 0x172   :  { %v1035_v9 = vadd.f32 %v1937_v4, %v2425_v15  ;;  %v2457_v10 = vadd.f32 %v1998_v0, %v1032_v3  ;;  %2064 = vmatprep.subr.bf16.mxu0 %v2184_v1  ;;  %2094 = vmatprep.subr.bf16.mxu1 %v2184_v1 }
 0x173   :  { %2065 = vmatpush3.bf16.msra.mxu0 %v2184_v1  ;;  %2102 = vmatpush3.bf16.msra.mxu1 %v2184_v1 }
 0x174   :  { %v2459_v11 = vadd.f32 %v2001_v8, %v1035_v9  ;;  %v1938_v12 = vpop.f32.mrb[36].mxu0  ;;  %v1242_v14 = vmul.f32 %v2457_v10, %v2457_v10 }
 0x175   :  { %v2002_v16 = vpop.f32.mrb[36].mxu1  ;;  %v1939_v17 = vpop.f32.mrb[37].mxu0 }
 0x176   :  { %v1940_v18 = vadd.f32 %v1939_v17, %v1938_v12  ;;  %v2003_v19 = vpop.f32.mrb[37].mxu1  ;;  %v1941_v20 = vpop.f32.mrb[38].mxu0  ;;  %1258 = vadd.xlane.f32.xlu0 %v1242_v14  ;;  %v1243_v28 = vmul.f32 %v2459_v11, %v2459_v11 }
 0x177   :  { %v2004_v13 = vadd.f32 %v2003_v19, %v2002_v16  ;;  %v2005_v22 = vpop.f32.mrb[38].mxu1  ;;  %v1942_v24 = vpop.f32.mrb[39].mxu0  ;;  %v2185_v16 = vld [vmem:[#allocation8 + $0x18] sm:$0xff]  }
 0x178   :  { %v1040_v25 = vadd.f32 %v1940_v18, %v2427_v27  ;;  %v1943_v15 = vadd.f32 %v1942_v24, %v1941_v20  ;;  %v2006_v26 = vpop.f32.mrb[39].mxu1  ;;  %2066 = vmatprep.subr.bf16.mxu0 %v2185_v16  ;;  %2095 = vmatprep.subr.bf16.mxu1 %v2185_v16 }
 0x179   :  { %v2007_v30 = vadd.f32 %v2006_v26, %v2005_v22  ;;  %2067 = vmatpush3.bf16.msra.mxu0 %v2185_v16  ;;  %2103 = vmatpush3.bf16.msra.mxu1 %v2185_v16 }
 0x17a   :  { %v2466_v31 = vadd.f32 %v2004_v13, %v1040_v25  ;;  %v1043_v32 = vadd.f32 %v1943_v15, %v2429_v29  ;;  %1260 = vadd.xlane.f32.xlu0 %v1243_v28  ;;  %v2186_v25 = vld [vmem:[#allocation8 + $0x20] sm:$0xff]  }
 0x17b   :  { %2068 = vmatprep.subr.bf16.mxu0 %v2186_v25  ;;  %2096 = vmatprep.subr.bf16.mxu1 %v2186_v25 }
 0x17c   :  { %v1944_v33 = vpop.f32.mrb[40].mxu0  ;;  %v1244_v34 = vmul.f32 %v2466_v31, %v2466_v31  ;;  %v2471_v35 = vadd.f32 %v2007_v30, %v1043_v32 }
 0x17d   :  { %v2008_v36 = vpop.f32.mrb[40].mxu1  ;;  %v1945_v38 = vpop.f32.mrb[41].mxu0  ;;  %2069 = vmatpush3.bf16.msra.mxu0 %v2186_v25  ;;  %2104 = vmatpush3.bf16.msra.mxu1 %v2186_v25 }
 0x17e   :  { %v1946_v27 = vadd.f32 %v1945_v38, %v1944_v33  ;;  %v2009_v40 = vpop.f32.mrb[41].mxu1  ;;  %v1947_v42 = vpop.f32.mrb[42].mxu0  ;;  %1262 = vadd.xlane.f32.xlu0 %v1244_v34  ;;  %v1245_v44 = vmul.f32 %v2471_v35, %v2471_v35 }
 0x17f   :  { %v2010_v45 = vadd.f32 %v2009_v40, %v2008_v36  ;;  %v2011_v46 = vpop.f32.mrb[42].mxu1  ;;  %v1948_v47 = vpop.f32.mrb[43].mxu0 }
 0x180   :  { %v1048_v29 = vadd.f32 %v1946_v27, %v2431_v41  ;;  %v1949_v48 = vadd.f32 %v1948_v47, %v1947_v42  ;;  %v2012_v49 = vpop.f32.mrb[43].mxu1  ;;  %1264 = vadd.xlane.f32.xlu1 %v1245_v44  ;;  %v2187_v27 = vld [vmem:[#allocation8 + $0x28] sm:$0xff]  }
 0x181   :  { %v2013_v50 = vadd.f32 %v2012_v49, %v2011_v46  ;;  %2070 = vmatprep.subr.bf16.mxu0 %v2187_v27  ;;  %2097 = vmatprep.subr.bf16.mxu1 %v2187_v27 }
 0x182   :  { %v2476_v51 = vadd.f32 %v2010_v45, %v1048_v29  ;;  %v1051_v52 = vadd.f32 %v1949_v48, %v2433_v43  ;;  %2071 = vmatpush3.bf16.msra.mxu0 %v2187_v27  ;;  %v2188_v48 = vld [vmem:[#allocation8 + $0x30] sm:$0xff]   ;;  %2105 = vmatpush3.bf16.msra.mxu1 %v2187_v27 }
 0x183   :  { %2072 = vmatprep.subr.bf16.mxu0 %v2188_v48  ;;  %2098 = vmatprep.subr.bf16.mxu1 %v2188_v48 }
 0x184   :  { %v2479_v54 = vadd.f32 %v2013_v50, %v1051_v52  ;;  %v1950_v58 = vpop.f32.mrb[44].mxu0  ;;  %v1246_v59 = vmul.f32 %v2476_v51, %v2476_v51 }
 0x185   :  { %v2014_v60 = vpop.f32.mrb[44].mxu1  ;;  %v1951_v61 = vpop.f32.mrb[45].mxu0 }
 0x186   :  { %v1952_v62 = vadd.f32 %v1951_v61, %v1950_v58  ;;  %v2015_v63 = vpop.f32.mrb[45].mxu1  ;;  %v1953_v0 = vpop.f32.mrb[46].mxu0  ;;  %1266 = vadd.xlane.f32.xlu0 %v1246_v59  ;;  %v1247_v41 = vmul.f32 %v2479_v54, %v2479_v54  ;;  %2073 = vmatpush3.bf16.msra.mxu0 %v2188_v48 }
 0x187   :  { %v2016_v2 = vadd.f32 %v2015_v63, %v2014_v60  ;;  %v2017_v3 = vpop.f32.mrb[46].mxu1  ;;  %v1954_v4 = vpop.f32.mrb[47].mxu0  ;;  %2106 = vmatpush3.bf16.msra.mxu1 %v2188_v48 }
 0x188   :  { %v1056_v43 = vadd.f32 %v1952_v62, %v2435_v55  ;;  %v1955_v6 = vadd.f32 %v1954_v4, %v1953_v0  ;;  %v2018_v8 = vpop.f32.mrb[47].mxu1  ;;  %1268 = vadd.xlane.f32.xlu1 %v1247_v41  ;;  %v2189_v0 = vld [vmem:[#allocation8 + $0x38] sm:$0xff]  }
 0x189   :  { %v2019_v9 = vadd.f32 %v2018_v8, %v2017_v3  ;;  %2074 = vmatprep.subr.bf16.mxu0 %v2189_v0  ;;  %2099 = vmatprep.subr.bf16.mxu1 %v2189_v0 }
 0x18a   :  { %v2486_v12 = vadd.f32 %v2016_v2, %v1056_v43  ;;  %v1059_v14 = vadd.f32 %v1955_v6, %v2437_v57  ;;  %2075 = vmatpush3.bf16.msra.mxu0 %v2189_v0 }
 0x18b   :  { %2107 = vmatpush3.bf16.msra.mxu1 %v2189_v0 }
 0x18c   :  { %v2489_v17 = vadd.f32 %v2019_v9, %v1059_v14  ;;  %v1956_v18 = vpop.f32.mrb[48].mxu0  ;;  %v1248_v19 = vmul.f32 %v2486_v12, %v2486_v12 }
 0x18d   :  { %v2020_v55 = vpop.f32.mrb[48].mxu1  ;;  %v1957_v20 = vpop.f32.mrb[49].mxu0 }
 0x18e   :  { %v1958_v13 = vadd.f32 %v1957_v20, %v1956_v18  ;;  %v2021_v22 = vpop.f32.mrb[49].mxu1  ;;  %v1959_v24 = vpop.f32.mrb[50].mxu0  ;;  %1270 = vadd.xlane.f32.xlu0 %v1248_v19  ;;  %v1249_v57 = vmul.f32 %v2489_v17, %v2489_v17 }
 0x18f   :  { %v2022_v15 = vadd.f32 %v2021_v22, %v2020_v55  ;;  %v2023_v26 = vpop.f32.mrb[50].mxu1  ;;  %v1960_v28 = vpop.f32.mrb[51].mxu0 }
 0x190   :  { %v1064_v30 = vadd.f32 %v1958_v13, %v2439_v5  ;;  %v1961_v32 = vadd.f32 %v1960_v28, %v1959_v24  ;;  %v2024_v33 = vpop.f32.mrb[51].mxu1  ;;  %1272 = vadd.xlane.f32.xlu1 %v1249_v57 }
 0x191   :  { %v2025_v34 = vadd.f32 %v2024_v33, %v2023_v26 }
 0x192   :  { %v2496_v36 = vadd.f32 %v2022_v15, %v1064_v30  ;;  %v1067_v38 = vadd.f32 %v1961_v32, %v2441_v7 }
 0x194   :  { %v2499_v40 = vadd.f32 %v2025_v34, %v1067_v38  ;;  %v1962_v42 = vpop.f32.mrb[52].mxu0  ;;  %v1250_v44 = vmul.f32 %v2496_v36, %v2496_v36 }
 0x195   :  { %v2026_v5 = vpop.f32.mrb[52].mxu1  ;;  %v1963_v45 = vpop.f32.mrb[53].mxu0 }
 0x196   :  { %v1964_v46 = vadd.f32 %v1963_v45, %v1962_v42  ;;  %v2027_v47 = vpop.f32.mrb[53].mxu1  ;;  %v1965_v29 = vpop.f32.mrb[54].mxu0  ;;  %1274 = vadd.xlane.f32.xlu1 %v1250_v44  ;;  %v1251_v60 = vmul.f32 %v2499_v40, %v2499_v40 }
 0x197   :  { %v2028_v7 = vadd.f32 %v2027_v47, %v2026_v5  ;;  %v2029_v49 = vpop.f32.mrb[54].mxu1  ;;  %v1966_v50 = vpop.f32.mrb[55].mxu0 }
 0x198   :  { %v1072_v52 = vadd.f32 %v1964_v46, %v2443_v21  ;;  %v1967_v58 = vadd.f32 %v1966_v50, %v1965_v29  ;;  %v2030_v59 = vpop.f32.mrb[55].mxu1 }
 0x199   :  { %v2031_v61 = vadd.f32 %v2030_v59, %v2029_v49 }
 0x19a   :  { %v2506_v62 = vadd.f32 %v2028_v7, %v1072_v52  ;;  %v1075_v63 = vadd.f32 %v1967_v58, %v2445_v23  ;;  %1276 = vadd.xlane.f32.xlu1 %v1251_v60 }
 0x19c   :  { %v2509_v41 = vadd.f32 %v2031_v61, %v1075_v63  ;;  %v1968_v1 = vpop.f32.mrb[56].mxu0  ;;  %v1252_v21 = vmul.f32 %v2506_v62, %v2506_v62 }
 0x19d   :  { %v2032_v2 = vpop.f32.mrb[56].mxu1  ;;  %v1969_v3 = vpop.f32.mrb[57].mxu0 }
 0x19e   :  { %v1970_v4 = vadd.f32 %v1969_v3, %v1968_v1  ;;  %v2033_v43 = vpop.f32.mrb[57].mxu1  ;;  %v1971_v6 = vpop.f32.mrb[58].mxu0  ;;  %1278 = vadd.xlane.f32.xlu0 %v1252_v21  ;;  %v1253_v23 = vmul.f32 %v2509_v41, %v2509_v41 }
 0x19f   :  { %v2034_v8 = vadd.f32 %v2033_v43, %v2032_v2  ;;  %v2035_v9 = vpop.f32.mrb[58].mxu1  ;;  %v1972_v14 = vpop.f32.mrb[59].mxu0 }
 0x1a0   :  { %v1080_v16 = vadd.f32 %v1970_v4, %v2447_v37  ;;  %v1973_v18 = vadd.f32 %v1972_v14, %v1971_v6  ;;  %v2036_v19 = vpop.f32.mrb[59].mxu1  ;;  %1280 = vadd.xlane.f32.xlu1 %v1253_v23 }
 0x1a1   :  { %v2037_v55 = vadd.f32 %v2036_v19, %v2035_v9 }
 0x1a2   :  { %v2516_v20 = vadd.f32 %v2034_v8, %v1080_v16  ;;  %v1083_v13 = vadd.f32 %v1973_v18, %v2449_v39 }
 0x1a4   :  { %v2519_v22 = vadd.f32 %v2037_v55, %v1083_v13  ;;  %v1974_v24 = vpop.f32.mrb[60].mxu0  ;;  %v1254_v57 = vmul.f32 %v2516_v20, %v2516_v20 }
 0x1a5   :  { %v2038_v25 = vpop.f32.mrb[60].mxu1  ;;  %v1975_v15 = vpop.f32.mrb[61].mxu0 }
 0x1a6   :  { %v1976_v26 = vadd.f32 %v1975_v15, %v1974_v24  ;;  %v2039_v28 = vpop.f32.mrb[61].mxu1  ;;  %v1977_v30 = vpop.f32.mrb[62].mxu0  ;;  %1282 = vadd.xlane.f32.xlu0 %v1254_v57  ;;  %v1255_v37 = vmul.f32 %v2519_v22, %v2519_v22 }
 0x1a7   :  { %v2040_v32 = vadd.f32 %v2039_v28, %v2038_v25  ;;  %v2041_v33 = vpop.f32.mrb[62].mxu1  ;;  %v1978_v34 = vpop.f32.mrb[63].mxu0 }
 0x1a8   :  { %v1088_v39 = vadd.f32 %v1976_v26, %v2451_v53  ;;  %v1979_v38 = vadd.f32 %v1978_v34, %v1977_v30  ;;  %v2042_v27 = vpop.f32.mrb[63].mxu1  ;;  %1284 = vadd.xlane.f32.xlu1 %v1255_v37 }
 0x1a9   :  { %v2043_v42 = vadd.f32 %v2042_v27, %v2041_v33 }
 0x1aa   :  { %v2526_v44 = vadd.f32 %v2040_v32, %v1088_v39  ;;  %v1091_v5 = vadd.f32 %v1979_v38, %v2453_v56 }
 0x1ac   :  { %v2529_v45 = vadd.f32 %v2043_v42, %v1091_v5  ;;  %v1256_v46 = vmul.f32 %v2526_v44, %v2526_v44 }
 0x1ae   :  { %1286 = vadd.xlane.f32.xlu0 %v1256_v46  ;;  %v1257_v47 = vmul.f32 %v2529_v45, %v2529_v45 }
 0x1b0   :  { %1288 = vadd.xlane.f32.xlu1 %v1257_v47 }
 0x203   :  { %v1259_v29 = vpop.xlane.xlu0 %1258 }
 0x204   :  { %v1290_v53 = vmax.f32 %v1259_v29, 1e-30 }
 0x206   :  { %2190 = vrsqrt.f32 %v1290_v53 }
 0x207   :  { %v1261_v48 = vpop.xlane.xlu0 %1260 }
 0x208   :  { %v1291_v7 = vmax.f32 %v1261_v48, 1e-30 }
 0x20a   :  { %2192 = vrsqrt.f32 %v1291_v7 }
 0x20b   :  { %v1263_v49 = vpop.xlane.xlu0 %1262 }
 0x20c   :  { %v1292_v50 = vmax.f32 %v1263_v49, 1e-30 }
 0x20d   :  { %v1265_v52 = vpop.xlane.xlu1 %1264 }
 0x20e   :  { %2194 = vrsqrt.f32 %v1292_v50  ;;  %v1293_v56 = vmax.f32 %v1265_v52, 1e-30 }
 0x210   :  { %2196 = vrsqrt.f32 %v1293_v56  ;;  %v2191_v58 = vpop.eup %2190 }
 0x211   :  { %v1322_v0 = vmul.f32 %v2191_v58, %v2457_v10 }
 0x213   :  { %v1267_v59 = vpop.xlane.xlu0 %1266 }
 0x214   :  { %v2193_v60 = vpop.eup %2192  ;;  %v1294_v61 = vmax.f32 %v1267_v59, 1e-30 }
 0x215   :  { %v1269_v63 = vpop.xlane.xlu1 %1268  ;;  %v1323_v1 = vmul.f32 %v2193_v60, %v2459_v11 }
 0x216   :  { %2198 = vrsqrt.f32 %v1294_v61  ;;  %v1295_v21 = vmax.f32 %v1269_v63, 1e-30 }
 0x217   :  { %v1338_v2 = vpack.c.bf16 %v1323_v1, %v1322_v0 }
 0x218   :  { %v2195_v3 = vpop.eup %2194  ;;  %2200 = vrsqrt.f32 %v1295_v21 }
 0x219   :  { %2076 = vmatprep.mubr.bf16.mxu0 %v1338_v2  ;;  %1745 = vst [vmem:[#allocation10] sm:$0xff] %v1338_v2   ;;  %v1324_v43 = vmul.f32 %v2195_v3, %v2466_v31 }
 0x21a   :  { %v2197_v4 = vpop.eup %2196 }
 0x21b   :  { %v1325_v6 = vmul.f32 %v2197_v4, %v2471_v35  ;;  %v1271_v23 = vpop.xlane.xlu0 %1270 }
 0x21c   :  { %v1296_v8 = vmax.f32 %v1271_v23, 1e-30 }
 0x21d   :  { %v1273_v9 = vpop.xlane.xlu1 %1272  ;;  %v1339_v14 = vpack.c.bf16 %v1325_v6, %v1324_v43 }
 0x21e   :  { %2202 = vrsqrt.f32 %v1296_v8  ;;  %v1297_v10 = vmax.f32 %v1273_v9, 1e-30 }
 0x21f   :  { %2077 = vmatmul.mubr.bf16.vlgmr.msra.gmra.mrb[64].mxu0 %v1339_v14  ;;  %1781 = vst [vmem:[#allocation10 + $0x8] sm:$0xff] %v1339_v14  }
 0x220   :  { %v2199_v11 = vpop.eup %2198  ;;  %2204 = vrsqrt.f32 %v1297_v10 }
 0x221   :  { %v1326_v19 = vmul.f32 %v2199_v11, %v2476_v51 }
 0x222   :  { %v2201_v16 = vpop.eup %2200 }
 0x223   :  { %v1275_v18 = vpop.xlane.xlu1 %1274  ;;  %v1327_v55 = vmul.f32 %v2201_v16, %v2479_v54 }
 0x224   :  { %v1298_v13 = vmax.f32 %v1275_v18, 1e-30 }
 0x225   :  { %v1340_v31 = vpack.c.bf16 %v1327_v55, %v1326_v19 }
 0x226   :  { %2206 = vrsqrt.f32 %v1298_v13 }
 0x227   :  { %v1277_v24 = vpop.xlane.xlu1 %1276  ;;  %2080 = vmatprep.mubr.bf16.mxu0 %v1340_v31  ;;  %1782 = vst [vmem:[#allocation10 + $0x10] sm:$0xff] %v1340_v31  }
 0x228   :  { %v2203_v35 = vpop.eup %2202  ;;  %v1299_v57 = vmax.f32 %v1277_v24, 1e-30 }
 0x229   :  { %v1328_v26 = vmul.f32 %v2203_v35, %v2486_v12 }
 0x22a   :  { %v2205_v25 = vpop.eup %2204  ;;  %2208 = vrsqrt.f32 %v1299_v57 }
 0x22b   :  { %v1279_v15 = vpop.xlane.xlu0 %1278  ;;  %v1329_v28 = vmul.f32 %v2205_v25, %v2489_v17 }
 0x22c   :  { %v1300_v30 = vmax.f32 %v1279_v15, 1e-30 }
 0x22d   :  { %v1281_v37 = vpop.xlane.xlu1 %1280  ;;  %v1341_v51 = vpack.c.bf16 %v1329_v28, %v1328_v26 }
 0x22e   :  { %2210 = vrsqrt.f32 %v1300_v30  ;;  %v1301_v54 = vmax.f32 %v1281_v37, 1e-30 }
 0x22f   :  { %2081 = vmatmul.mubr.bf16.gmra.mrb[68].mxu0 %v1341_v51  ;;  %1783 = vst [vmem:[#allocation10 + $0x18] sm:$0xff] %v1341_v51  }
 0x230   :  { %2212 = vrsqrt.f32 %v1301_v54  ;;  %v2207_v32 = vpop.eup %2206 }
 0x231   :  { %v1330_v27 = vmul.f32 %v2207_v32, %v2496_v36 }
 0x233   :  { %v1283_v33 = vpop.xlane.xlu0 %1282 }
 0x234   :  { %v2209_v34 = vpop.eup %2208  ;;  %v1302_v39 = vmax.f32 %v1283_v33, 1e-30 }
 0x235   :  { %v1285_v38 = vpop.xlane.xlu1 %1284  ;;  %v1331_v42 = vmul.f32 %v2209_v34, %v2499_v40 }
 0x236   :  { %2214 = vrsqrt.f32 %v1302_v39  ;;  %v1303_v12 = vmax.f32 %v1285_v38, 1e-30 }
 0x237   :  { %v1342_v17 = vpack.c.bf16 %v1331_v42, %v1330_v27 }
 0x238   :  { %v2211_v5 = vpop.eup %2210  ;;  %2216 = vrsqrt.f32 %v1303_v12 }
 0x239   :  { %2084 = vmatprep.mubr.bf16.mxu1 %v1342_v17  ;;  %1784 = vst [vmem:[#allocation10 + $0x20] sm:$0xff] %v1342_v17   ;;  %v1332_v47 = vmul.f32 %v2211_v5, %v2506_v62 }
 0x23a   :  { %v2213_v46 = vpop.eup %2212 }
 0x23b   :  { %v1333_v29 = vmul.f32 %v2213_v46, %v2509_v41  ;;  %v1287_v53 = vpop.xlane.xlu0 %1286 }
 0x23c   :  { %v1304_v48 = vmax.f32 %v1287_v53, 1e-30 }
 0x23d   :  { %v1289_v7 = vpop.xlane.xlu1 %1288  ;;  %v1343_v49 = vpack.c.bf16 %v1333_v29, %v1332_v47 }
 0x23e   :  { %2218 = vrsqrt.f32 %v1304_v48  ;;  %v1305_v36 = vmax.f32 %v1289_v7, 1e-30 }
 0x23f   :  { %2085 = vmatmul.mubr.bf16.vlgmr.msra.gmra.mrb[64].mxu1 %v1343_v49  ;;  %1785 = vst [vmem:[#allocation10 + $0x28] sm:$0xff] %v1343_v49  }
 0x240   :  { %v2215_v40 = vpop.eup %2214  ;;  %2220 = vrsqrt.f32 %v1305_v36 }
 0x241   :  { %v1334_v52 = vmul.f32 %v2215_v40, %v2516_v20 }
 0x242   :  { %v2217_v50 = vpop.eup %2216 }
 0x243   :  { %v1335_v56 = vmul.f32 %v2217_v50, %v2519_v22 }
 0x245   :  { %v1344_v58 = vpack.c.bf16 %v1335_v56, %v1334_v52 }
 0x247   :  { %2088 = vmatprep.mubr.bf16.mxu1 %v1344_v58  ;;  %1786 = vst [vmem:[#allocation10 + $0x30] sm:$0xff] %v1344_v58  }
 0x248   :  { %v2219_v62 = vpop.eup %2218 }
 0x249   :  { %v1336_v59 = vmul.f32 %v2219_v62, %v2526_v44 }
 0x24a   :  { %v2221_v41 = vpop.eup %2220 }
 0x24b   :  { %v1337_v60 = vmul.f32 %v2221_v41, %v2529_v45 }
 0x24d   :  { %v1345_v61 = vpack.c.bf16 %v1337_v60, %v1336_v59 }
 0x24f   :  { %2089 = vmatmul.mubr.bf16.gmra.mrb[68].mxu1 %v1345_v61  ;;  %1787 = vst [vmem:[#allocation10 + $0x38] sm:$0xff] %v1345_v61  }
 0x250   :  { %2299 = shalt.err (!%p2296_p0)
}
 0x251   :  { %s2300_s11 = scalar_lea.hbm %s2586_s5, 1024 }
 0x252   :  { %p2301_p1 = scmp.ne.s32.totalorder %s2586_s5, %s2300_s11  ;;  %p2304_p2 = scmp.lt.u32.totalorder %s2300_s11, %s2586_s5 }
 0x254   :  { %p2306_p3 = pnand %p2304_p2, %p2301_p1 }
 0x256   :  { %2309 = shalt.err (!%p2306_p3)
}
 0x257   :  { %1625 = dma.vmem_to_hbm [thread:$0]  %s1620_s7, 1024, %s2586_s5, [#allocation11], %s2341_s28, %s2341_s28, %s2342_s29  }
 0x258   :  { %v1700_v20 = vld [vmem:[%s2584_s3] ss:$0 sm:$0xff]  ;;  %s2347_s3 = smov [#allocation9]  }
 0x259   :  { %s1607_s5 = sshll.u32 %s2347_s3, 4  ;;  %s1608_s5 = int_to_ptr.vmem [resolvable:$true] %s1607_s5 }
 0x25a   :  { %s2310_s28 = scalar_lea.vmem %s1608_s5, 2048  ;;  %p2315_p5 = scmp.lt.s32.totalorder %s1608_s5, %s1608_s5 }
 0x25b   :  { %p2311_p4 = scmp.ne.s32.totalorder %s1608_s5, %s2310_s28  ;;  %p2316_p6 = scmp.lt.s32.totalorder %s2310_s28, %s2310_s28 }
 0x25d   :  { %p2317_p7 = por %p2316_p6, %p2315_p5 }
 0x25f   :  { %p2318_p8 = pnand %p2317_p7, %p2311_p4 }
 0x2f2   :  { %v2078_v22 = vpop.f32.mrb[64].mxu0 }
 0x2f3   :  { %v1460_v44 = vadd.f32 %v2078_v22, %v1700_v20  ;;  %v1451_v45 = vpop.f32.mrb[65].mxu0 }
 0x2f4   :  { %v1452_v63 = vadd.f32 %v1700_v20, %v1451_v45  ;;  %v2079_v0 = vpop.f32.mrb[66].mxu0 }
 0x2f5   :  { %1516 = vst [vmem:[#allocation9 + $0x10] sm:$0xff] %v1460_v44  ;;  %v1463_v1 = vadd.f32 %v2079_v0, %v1700_v20  ;;  %v1454_v21 = vpop.f32.mrb[67].mxu0 }
 0x2f6   :  { %1514 = vst [vmem:[#allocation9] sm:$0xff] %v1452_v63  ;;  %v1455_v2 = vadd.f32 %v1700_v20, %v1454_v21 }
 0x2f7   :  { %1517 = vst [vmem:[#allocation9 + $0x18] sm:$0xff] %v1463_v1 }
 0x2f8   :  { %1515 = vst [vmem:[#allocation9 + $0x8] sm:$0xff] %v1455_v2 }
 0x302   :  { %v2082_v3 = vpop.f32.mrb[68].mxu0 }
 0x303   :  { %v1476_v4 = vadd.f32 %v2082_v3, %v1700_v20  ;;  %v1467_v43 = vpop.f32.mrb[69].mxu0 }
 0x304   :  { %v1468_v6 = vadd.f32 %v1700_v20, %v1467_v43  ;;  %v2083_v23 = vpop.f32.mrb[70].mxu0 }
 0x305   :  { %1520 = vst [vmem:[#allocation9 + $0x30] sm:$0xff] %v1476_v4  ;;  %v1479_v8 = vadd.f32 %v2083_v23, %v1700_v20  ;;  %v1470_v9 = vpop.f32.mrb[71].mxu0 }
 0x306   :  { %1518 = vst [vmem:[#allocation9 + $0x20] sm:$0xff] %v1468_v6  ;;  %v1471_v14 = vadd.f32 %v1700_v20, %v1470_v9 }
 0x307   :  { %1521 = vst [vmem:[#allocation9 + $0x38] sm:$0xff] %v1479_v8 }
 0x308   :  { %1519 = vst [vmem:[#allocation9 + $0x28] sm:$0xff] %v1471_v14 }
 0x312   :  { %v2086_v10 = vpop.f32.mrb[64].mxu1 }
 0x313   :  { %v1492_v11 = vadd.f32 %v2086_v10, %v1700_v20  ;;  %v1483_v16 = vpop.f32.mrb[65].mxu1 }
 0x314   :  { %v1484_v18 = vadd.f32 %v1700_v20, %v1483_v16  ;;  %v2087_v19 = vpop.f32.mrb[66].mxu1 }
 0x315   :  { %1524 = vst [vmem:[#allocation9 + $0x50] sm:$0xff] %v1492_v11  ;;  %v1495_v55 = vadd.f32 %v2087_v19, %v1700_v20  ;;  %v1486_v13 = vpop.f32.mrb[67].mxu1 }
 0x316   :  { %1522 = vst [vmem:[#allocation9 + $0x40] sm:$0xff] %v1484_v18  ;;  %v1487_v31 = vadd.f32 %v1700_v20, %v1486_v13 }
 0x317   :  { %1525 = vst [vmem:[#allocation9 + $0x58] sm:$0xff] %v1495_v55 }
 0x318   :  { %1523 = vst [vmem:[#allocation9 + $0x48] sm:$0xff] %v1487_v31 }
 0x322   :  { %v2090_v24 = vpop.f32.mrb[68].mxu1 }
 0x323   :  { %v1508_v35 = vadd.f32 %v2090_v24, %v1700_v20  ;;  %v1499_v57 = vpop.f32.mrb[69].mxu1 }
 0x324   :  { %v1500_v25 = vadd.f32 %v1700_v20, %v1499_v57  ;;  %v2091_v15 = vpop.f32.mrb[70].mxu1 }
 0x325   :  { %1528 = vst [vmem:[#allocation9 + $0x70] sm:$0xff] %v1508_v35  ;;  %v1511_v26 = vadd.f32 %v2091_v15, %v1700_v20  ;;  %v1502_v28 = vpop.f32.mrb[71].mxu1 }
 0x326   :  { %1526 = vst [vmem:[#allocation9 + $0x60] sm:$0xff] %v1500_v25  ;;  %v1503_v30 = vadd.f32 %v1700_v20, %v1502_v28 }
 0x327   :  { %1529 = vst [vmem:[#allocation9 + $0x78] sm:$0xff] %v1511_v26 }
 0x328   :  { %1527 = vst [vmem:[#allocation9 + $0x68] sm:$0xff] %v1503_v30 }
 0x329   :  { %2321 = shalt.err (!%p2318_p8)
}
 0x32a   :  { %s2322_s20 = scalar_lea.hbm %s2585_s4, 2048 }
 0x32b   :  { %p2323_p9 = scmp.ne.s32.totalorder %s2585_s4, %s2322_s20  ;;  %p2326_p10 = scmp.lt.u32.totalorder %s2322_s20, %s2585_s4 }
 0x32d   :  { %p2328_p11 = pnand %p2326_p10, %p2323_p9 }
 0x32f   :  { %2331 = shalt.err (!%p2328_p11)
}
 0x330   :  { %s2348_s25 = smov 128   ;;  %s2349_s26 = smov 8  }
 0x331   :  { %1613 = dma.vmem_to_hbm [thread:$0]  %s1608_s5, 2048, %s2585_s4, [#allocation5], %s2348_s25, %s2348_s25, %s2349_s26  }
 0x332   :  { %2336 = dma.done.wait [#allocation5], 2048  }
 0x333   :  { %2337 = vsyncadd [#allocation5], 4294965248 }
 0x334   :  { %2338 = dma.done.wait [#allocation11], 1024  }
 0x335   :  { %2339 = vsyncadd [#allocation11], 4294966272 }
 0x336   :  { %1632 = vsyncpa [#allocation4], 1 }
 0x337   :  { %1633 = vsyncpa [#allocation7], 1 }
 0x338   :  { %1634 = vsyncpa [#allocation5], 1 }
 0x339   :  { %1635 = vsyncpa [#allocation11], 1 }

</bundles_post_ra>
